<compile_context>
chip_gen: v7x
topology: tpu7x:2x2x1
jax: 0.10.0
libtpu: 0.0.40
codegen_flags: <defaults>
</compile_context>

<pallas_src>
import math

import jax
import jax.numpy as jnp
from jax.experimental import pallas as pl
from jax.experimental.pallas import tpu as pltpu


def _round_up(x, m):
    return ((x + m - 1) // m) * m


def _nbytes(shape, dtype):
    return math.prod(shape) * jnp.dtype(dtype).itemsize


# ----------------------------------------------------------------------------
# Fused GRU-recurrence + VAE-head kernel (PyTorch nn.GRU gate order r, z, n)
# ----------------------------------------------------------------------------
def encoder_kernel(x_ref, wih_ref, whh_ref, bx_ref, bhn_ref,
                   whead_ref, bhead_ref, eps_ref, out_ref,
                   gx_ref, h_ref):
    Tc, Bb, Hp = x_ref.shape          # one (time-chunk, batch-block) tile
    Lp = eps_ref.shape[1]
    t_chunk = pl.program_id(1)

    # (Re)initialize the carried hidden state at the first time chunk of every
    # batch block (VMEM scratch persists across grid iterations).
    @pl.when(t_chunk == 0)
    def _init():
        h_ref[...] = jnp.zeros_like(h_ref)

    # ---- Hoisted input projection: ONE (Tc*Bb, Hp) x (Hp, 3Hp) MXU matmul per
    # time chunk, off the serial dependence chain.  Biases b_r/b_z are folded,
    # b_in kept in the n slab; b_hn stays separate (scaled by r). ----
    gx_all = jnp.dot(x_ref[...].reshape(Tc * Bb, Hp), wih_ref[...],
                     preferred_element_type=jnp.float32) + bx_ref[...]
    gx_ref[...] = gx_all.reshape(Tc, Bb, 3 * Hp)

    whh = whh_ref[...]                 # (Hp, 3Hp) bf16, columns [r | z | n]
    bhn = bhn_ref[...]                 # (1, Hp) f32

    # ---- Serial recurrence: only h @ W_hh on the critical path. ----
    # TODO(synk): for large production H keep W_hh stationary in the MXU via
    # pltpu.matmul_push_rhs / matmul_acc_lhs / matmul_pop.
    def step(t, h):
        g_x = gx_ref[t]                                           # (Bb, 3Hp) f32
        g_h = jnp.dot(h.astype(whh.dtype), whh,
                      preferred_element_type=jnp.float32)         # (Bb, 3Hp) f32
        # Hp is a multiple of 128 -> every gate slice is a free, lane-aligned view.
        r = jax.nn.sigmoid(g_x[:, :Hp] + g_h[:, :Hp])
        z = jax.nn.sigmoid(g_x[:, Hp:2 * Hp] + g_h[:, Hp:2 * Hp])
        n = jnp.tanh(g_x[:, 2 * Hp:] + r * (g_h[:, 2 * Hp:] + bhn))
        return (1.0 - z) * n + z * h                              # f32 state

    h_ref[...] = jax.lax.fori_loop(0, Tc, step, h_ref[...],
                                   unroll=min(4, Tc))             # bounded unroll

    # ---- Fused VAE head, only on the last time chunk. ----
    @pl.when(t_chunk == pl.num_programs(1) - 1)
    def _head():
        head = jnp.dot(h_ref[...].astype(whead_ref.dtype), whead_ref[...],
                       preferred_element_type=jnp.float32) + bhead_ref[...]
        mu = head[:, :Lp]
        log_var = head[:, Lp:]
        # Two lane-aligned stores into a lane-dense (Bb, 3*Lp) output slab:
        # [ z | mu | log_var ].
        out_ref[:, :Lp] = mu + eps_ref[...] * jnp.exp(log_var * 0.5)
        out_ref[:, Lp:] = head


def encoder_pallas(x_tbh, kp, eps, *, batch_block, time_block):
    """x_tbh: (T, Bp, Hp) bf16 (time-major, padded).  Returns (Bp, 3*Lp) f32."""
    T, Bp, Hp = x_tbh.shape
    Lp = eps.shape[1]
    bb, Tc = batch_block, time_block
    assert bb % 8 == 0, "batch block must be a multiple of 8 (16 preferred)"
    assert Bp % bb == 0 and T % Tc == 0
    assert Hp % 128 == 0 and Lp % 128 == 0
    nb, nt = Bp // bb, T // Tc

    # Explicit VMEM budget (double-buffered blocked operands + scratch + margin).
    est = (2 * _nbytes((Tc, bb, Hp), jnp.bfloat16)           # x tiles
           + 4 * _nbytes((Hp, 3 * Hp), jnp.bfloat16)         # W_ih, W_hh
           + 2 * _nbytes((Hp, 2 * Lp), jnp.bfloat16)         # W_head
           + 2 * (_nbytes((1, 3 * Hp), jnp.float32)
                  + _nbytes((1, Hp), jnp.float32)
                  + _nbytes((1, 2 * Lp), jnp.float32))       # biases
           + 2 * _nbytes((bb, Lp), jnp.float32)              # eps
           + 2 * _nbytes((bb, 3 * Lp), jnp.float32)          # out
           + _nbytes((Tc, bb, 3 * Hp), jnp.float32)          # gx scratch
           + _nbytes((bb, Hp), jnp.float32))                 # h scratch
    vmem_limit = int(min(max(2 * est, 16 << 20), 48 << 20))

    fixed = lambda shape: pl.BlockSpec(shape, lambda i, t: (0, 0))
    # NOTE (v7x, production H): halve the weight footprint by single-buffering
    # the constant-index weight specs (pipeline_mode=pl.Buffered(1)) or keeping
    # them manually resident in VMEM; double-buffered bf16 GRU weights at
    # H~2048 (~96 MiB) would not fit v7x's 64 MiB VMEM.
    out = pl.pallas_call(
        encoder_kernel,
        out_shape=jax.ShapeDtypeStruct((Bp, 3 * Lp), jnp.float32),
        grid=(nb, nt),                                        # (batch, time-chunk)
        in_specs=[
            pl.BlockSpec((Tc, bb, Hp), lambda i, t: (t, i, 0)),   # x, streamed
            fixed((Hp, 3 * Hp)),                                  # W_ih^T packed
            fixed((Hp, 3 * Hp)),                                  # W_hh^T packed
            fixed((1, 3 * Hp)),                                   # folded b_r/b_z/b_in
            fixed((1, Hp)),                                       # b_hn
            fixed((Hp, 2 * Lp)),                                  # [Wmu^T | Wsigma^T]
            fixed((1, 2 * Lp)),                                   # [bmu | bsigma]
            pl.BlockSpec((bb, Lp), lambda i, t: (i, 0)),          # eps
        ],
        out_specs=pl.BlockSpec((bb, 3 * Lp), lambda i, t: (i, 0)),
        scratch_shapes=[
            pltpu.VMEM((Tc, bb, 3 * Hp), jnp.float32),   # per-chunk gx = x@W_ih+b
            pltpu.VMEM((bb, Hp), jnp.float32),           # carried hidden state
        ],
        compiler_params=pltpu.CompilerParams(
            dimension_semantics=("parallel", "arbitrary"),
            vmem_limit_bytes=vmem_limit),
    )(x_tbh, kp["w_ih"], kp["w_hh"], kp["b_x"], kp["b_hn"],
      kp["w_head"], kp["b_head"], eps)
    return out


# ----------------------------------------------------------------------------
# Forward (embedding lookup + padding is JAX glue) and parameter packing
# ----------------------------------------------------------------------------
def encoder_forward(params, token_ids, eps, *,
                    batch_block=16, time_block=None, min_batch_blocks=2):
    kp = params["kernel"]
    L, Lp = params["L"], params["Lp"]
    B, T = token_ids.shape

    bb = batch_block
    assert bb % 8 == 0, "batch_block must be a multiple of 8 (16 preferred for bf16)"
    # >= 2 batch blocks so the "parallel" axis can shard across v7x's two TCs.
    nb = max(pl.cdiv(B, bb), min_batch_blocks)
    Bp = nb * bb
    Tc = time_block if time_block is not None else (8 if T % 8 == 0 else T)
    assert T % Tc == 0

    # Pad batch (ids with 0 -> valid embedding row; eps with 0) and latent dim.
    ids_p = jnp.zeros((Bp, T), token_ids.dtype).at[:B, :].set(token_ids)
    eps_p = jnp.zeros((Bp, Lp), jnp.float32).at[:B, :L].set(eps)

    # TODO(synk): the embedding gather has no clean BlockSpec form; kept as XLA
    # glue, gathered directly into time-major (T, Bp, Hp) so only the tiny
    # int32 id matrix is transposed, never the embedded activations.
    x_tbh = jnp.take(kp["embedding"], ids_p.T, axis=0).astype(jnp.bfloat16)

    out = encoder_pallas(x_tbh, kp, eps_p, batch_block=bb, time_block=Tc)
    z = out[:B, :L]
    mu = out[:B, Lp:Lp + L]
    log_var = out[:B, 2 * Lp:2 * Lp + L]
    return z, mu, log_var


def init_params(key, input_size, hidden_size, latent_size):
    H, L = hidden_size, latent_size
    Hp, Lp = _round_up(H, 128), _round_up(L, 128)
    k = jax.random.split(key, 9)
    s = 1.0 / math.sqrt(H)
    unif = lambda kk, shape: jax.random.uniform(kk, shape, jnp.float32, -s, s)

    # Raw PyTorch-layout f32 parameters (used by the independent f32 reference).
    w_ih = unif(k[0], (3 * H, H))          # nn.GRU weight_ih_l0, rows [r; z; n]
    w_hh = unif(k[1], (3 * H, H))
    b_ih = unif(k[2], (3 * H,))
    b_hh = unif(k[3], (3 * H,))
    embedding = jax.random.normal(k[4], (input_size, H), jnp.float32)
    w_mu, b_mu = unif(k[5], (L, H)), unif(k[6], (L,))
    w_sig, b_sig = unif(k[7], (L, H)), unif(k[8], (L,))

    # Kernel layouts: transposed, zero-padded so each gate owns a 128-lane-
    # aligned column slab; padded hidden lanes provably stay exactly 0.
    w_ih_p = jnp.zeros((Hp, 3 * Hp), jnp.float32)
    w_hh_p = jnp.zeros((Hp, 3 * Hp), jnp.float32)
    b_x_p = jnp.zeros((1, 3 * Hp), jnp.float32)
    for g in range(3):
        w_ih_p = w_ih_p.at[:H, g * Hp:g * Hp + H].set(w_ih[g * H:(g + 1) * H, :].T)
        w_hh_p = w_hh_p.at[:H, g * Hp:g * Hp + H].set(w_hh[g * H:(g + 1) * H, :].T)
        b_g = b_ih[g * H:(g + 1) * H] + (b_hh[g * H:(g + 1) * H] if g < 2 else 0.0)
        b_x_p = b_x_p.at[0, g * Hp:g * Hp + H].set(b_g)
    b_hn_p = jnp.zeros((1, Hp), jnp.float32).at[0, :H].set(b_hh[2 * H:])

    w_head_p = (jnp.zeros((Hp, 2 * Lp), jnp.float32)
                .at[:H, :L].set(w_mu.T)
                .at[:H, Lp:Lp + L].set(w_sig.T))
    b_head_p = (jnp.zeros((1, 2 * Lp), jnp.float32)
                .at[0, :L].set(b_mu)
                .at[0, Lp:Lp + L].set(b_sig))
    emb_p = jnp.zeros((input_size, Hp), jnp.float32).at[:, :H].set(embedding)

    kernel = {
        "embedding": emb_p,
        "w_ih": w_ih_p.astype(jnp.bfloat16),
        "w_hh": w_hh_p.astype(jnp.bfloat16),
        "b_x": b_x_p, "b_hn": b_hn_p,
        "w_head": w_head_p.astype(jnp.bfloat16),
        "b_head": b_head_p,
    }
    ref = {"embedding": embedding, "w_ih": w_ih, "w_hh": w_hh,
           "b_ih": b_ih, "b_hh": b_hh,
           "w_mu": w_mu, "b_mu": b_mu, "w_sig": w_sig, "b_sig": b_sig}
    return {"H": H, "L": L, "Hp": Hp, "Lp": Lp, "kernel": kernel, "ref": ref}


# Independent pure-f32 reference with exact PyTorch nn.GRU semantics.
def encoder_reference(params, token_ids, eps):
    H = params["H"]
    r = params["ref"]
    dot = lambda a, b: jnp.dot(a, b, precision=jax.lax.Precision.HIGHEST)
    emb = r["embedding"][token_ids]                 # (B, T, H), batch_first
    B, T, _ = emb.shape
    h = jnp.zeros((B, H), jnp.float32)
    for t in range(T):
        gx = dot(emb[:, t, :], r["w_ih"].T) + r["b_ih"]
        gh = dot(h, r["w_hh"].T) + r["b_hh"]
        rg = jax.nn.sigmoid(gx[:, :H] + gh[:, :H])
        zg = jax.nn.sigmoid(gx[:, H:2 * H] + gh[:, H:2 * H])
        ng = jnp.tanh(gx[:, 2 * H:] + rg * gh[:, 2 * H:])
        h = (1.0 - zg) * ng + zg * h
    mu = dot(h, r["w_mu"].T) + r["b_mu"]
    log_var = dot(h, r["w_sig"].T) + r["b_sig"]
    return mu + eps * jnp.exp(log_var * 0.5), mu, log_var


if __name__ == "__main__":
    B, T = 4, 8
    input_size, hidden_size, latent_size = 20, 32, 10

    key = jax.random.PRNGKey(0)
    kparam, kx, ke = jax.random.split(key, 3)
    params = init_params(kparam, input_size, hidden_size, latent_size)
    token_ids = jax.random.randint(kx, (B, T), 0, input_size, dtype=jnp.int32)
    # eps ~ N(0, 1) for the reparametrization trick (torch.randn equivalent),
    # passed explicitly for determinism.
    eps = jax.random.normal(ke, (B, latent_size), jnp.float32)

    z, mu, log_var = encoder_forward(params, token_ids, eps,
                                     batch_block=16, time_block=4,
                                     min_batch_blocks=2)
    jax.block_until_ready((z, mu, log_var))

    assert z.shape == (B, latent_size)
    assert mu.shape == (B, latent_size)
    assert log_var.shape == (B, latent_size)
    assert jnp.all(jnp.isfinite(z)) and jnp.all(jnp.isfinite(mu))
    assert jnp.all(jnp.isfinite(log_var))

    z_r, mu_r, lv_r = encoder_reference(params, token_ids, eps)
    max_diff = max(float(jnp.max(jnp.abs(z - z_r))),
                   float(jnp.max(jnp.abs(mu - mu_r))),
                   float(jnp.max(jnp.abs(log_var - lv_r))))
    # Kernel uses bf16 MXU operands; tolerance covers bf16 vs strict-f32 reference.
    assert max_diff < 1e-1, f"mismatch vs f32 reference: {max_diff}"

    print("KERNEL_OK")
</pallas_src>

<mosaic_0001>
module attributes {stable_mosaic.version = 11 : i64} {
  func.func @encoder_kernel(%arg0: i32, %arg1: i32, %arg2: memref<4x16x128xbf16, #tpu.memory_space<vmem>>, %arg3: memref<128x384xbf16, #tpu.memory_space<vmem>>, %arg4: memref<128x384xbf16, #tpu.memory_space<vmem>>, %arg5: memref<1x384xf32, #tpu.memory_space<vmem>>, %arg6: memref<1x128xf32, #tpu.memory_space<vmem>>, %arg7: memref<128x256xbf16, #tpu.memory_space<vmem>>, %arg8: memref<1x256xf32, #tpu.memory_space<vmem>>, %arg9: memref<16x128xf32, #tpu.memory_space<vmem>>, %arg10: memref<16x384xf32, #tpu.memory_space<vmem>>, %arg11: memref<4x16x384xf32, #tpu.memory_space<vmem>>, %arg12: memref<16x128xf32, #tpu.memory_space<vmem>>) attributes {dimension_semantics = [#tpu.dimension_semantics<parallel>, #tpu.dimension_semantics<arbitrary>], iteration_bounds = array<i64: 2, 2>, scalar_prefetch = 0 : i64, scratch_operands = 2 : i64, tpu.core_type = #tpu.core_type<tc>, window_params = [{transform_indices = @transform_0, window_bounds = array<i64: 4, 16, 128>}, {pipeline_mode = #tpu.pipeline_mode<synchronous>, transform_indices = @transform_1, window_bounds = array<i64: 128, 384>}, {pipeline_mode = #tpu.pipeline_mode<synchronous>, transform_indices = @transform_2, window_bounds = array<i64: 128, 384>}, {pipeline_mode = #tpu.pipeline_mode<synchronous>, transform_indices = @transform_3, window_bounds = array<i64: 1, 384>}, {pipeline_mode = #tpu.pipeline_mode<synchronous>, transform_indices = @transform_4, window_bounds = array<i64: 1, 128>}, {pipeline_mode = #tpu.pipeline_mode<synchronous>, transform_indices = @transform_5, window_bounds = array<i64: 128, 256>}, {pipeline_mode = #tpu.pipeline_mode<synchronous>, transform_indices = @transform_6, window_bounds = array<i64: 1, 256>}, {transform_indices = @transform_7, window_bounds = array<i64: 16, 128>}, {transform_indices = @transform_8, window_bounds = array<i64: 16, 384>}]} {
    %c0_i32 = arith.constant 0 : i32
    %0 = arith.cmpi eq, %arg1, %c0_i32 : i32
    %1 = arith.extui %0 : i1 to i32
    %c0_i32_0 = arith.constant 0 : i32
    %2 = arith.cmpi ne, %1, %c0_i32_0 : i32
    scf.if %2 {
      %cst_45 = arith.constant 0.000000e+00 : f32
      %151 = vector.broadcast %cst_45 : f32 to vector<16x128xf32>
      %c0_46 = arith.constant 0 : index
      %c0_47 = arith.constant 0 : index
      %152 = vector.load %arg12[%c0_46, %c0_47] : memref<16x128xf32, #tpu.memory_space<vmem>>, vector<16x128xf32>
      tpu.vector_store %arg12[%c0_46, %c0_47], %151 {strides = array<i32>} : memref<16x128xf32, #tpu.memory_space<vmem>>, vector<16x128xf32>,
    } else {
    }
    %c0 = arith.constant 0 : index
    %c0_1 = arith.constant 0 : index
    %c0_2 = arith.constant 0 : index
    %3 = vector.load %arg2[%c0, %c0_1, %c0_2] : memref<4x16x128xbf16, #tpu.memory_space<vmem>>, vector<4x16x128xbf16>
    %4 = vector.shape_cast %3 : vector<4x16x128xbf16> to vector<64x128xbf16>
    %c0_3 = arith.constant 0 : index
    %c0_4 = arith.constant 0 : index
    %5 = vector.load %arg3[%c0_3, %c0_4] : memref<128x384xbf16, #tpu.memory_space<vmem>>, vector<128x384xbf16>
    %cst = arith.constant dense<0.000000e+00> : vector<64x384xf32>
    %6 = tpu.matmul %4, %5, %cst {dimension_numbers = #tpu.dot_dimension_numbers<[1], [0], [0], [1], [0, 0, 1, 1], [], []>} : vector<64x128xbf16>, vector<128x384xbf16>, vector<64x384xf32> -> vector<64x384xf32>
    %c0_5 = arith.constant 0 : index
    %c0_6 = arith.constant 0 : index
    %7 = vector.load %arg5[%c0_5, %c0_6] : memref<1x384xf32, #tpu.memory_space<vmem>>, vector<1x384xf32>
    %8 = vector.broadcast %7 : vector<1x384xf32> to vector<64x384xf32>
    %9 = arith.addf %6, %8 : vector<64x384xf32>
    %10 = vector.shape_cast %9 : vector<64x384xf32> to vector<4x16x384xf32>
    %c0_7 = arith.constant 0 : index
    %c0_8 = arith.constant 0 : index
    %c0_9 = arith.constant 0 : index
    %11 = vector.load %arg11[%c0_7, %c0_8, %c0_9] : memref<4x16x384xf32, #tpu.memory_space<vmem>>, vector<4x16x384xf32>
    tpu.vector_store %arg11[%c0_7, %c0_8, %c0_9], %10 {strides = array<i32>} : memref<4x16x384xf32, #tpu.memory_space<vmem>>, vector<4x16x384xf32>,
    %c0_10 = arith.constant 0 : index
    %c0_11 = arith.constant 0 : index
    %12 = vector.load %arg4[%c0_10, %c0_11] : memref<128x384xbf16, #tpu.memory_space<vmem>>, vector<128x384xbf16>
    %c0_12 = arith.constant 0 : index
    %c0_13 = arith.constant 0 : index
    %13 = vector.load %arg6[%c0_12, %c0_13] : memref<1x128xf32, #tpu.memory_space<vmem>>, vector<1x128xf32>
    %c0_14 = arith.constant 0 : index
    %c0_15 = arith.constant 0 : index
    %14 = vector.load %arg12[%c0_14, %c0_15] : memref<16x128xf32, #tpu.memory_space<vmem>>, vector<16x128xf32>
    %c0_i32_16 = arith.constant 0 : i32
    %15 = arith.index_cast %c0_i32_16 : i32 to index
    %c0_17 = arith.constant 0 : index
    %c0_18 = arith.constant 0 : index
    %16 = vector.load %arg11[%15, %c0_17, %c0_18] : memref<4x16x384xf32, #tpu.memory_space<vmem>>, vector<1x16x384xf32>
    %17 = vector.shape_cast %16 : vector<1x16x384xf32> to vector<16x384xf32>
    %18 = arith.truncf %14 : vector<16x128xf32> to vector<16x128xbf16>
    %cst_19 = arith.constant dense<0.000000e+00> : vector<16x384xf32>
    %19 = tpu.matmul %18, %12, %cst_19 {dimension_numbers = #tpu.dot_dimension_numbers<[1], [0], [0], [1], [0, 0, 1, 1], [], []>} : vector<16x128xbf16>, vector<128x384xbf16>, vector<16x384xf32> -> vector<16x384xf32>
    %20 = vector.extract_strided_slice %17 {offsets = [0, 0], sizes = [16, 128], strides = [1, 1]} : vector<16x384xf32> to vector<16x128xf32>
    %21 = vector.extract_strided_slice %19 {offsets = [0, 0], sizes = [16, 128], strides = [1, 1]} : vector<16x384xf32> to vector<16x128xf32>
    %22 = arith.addf %20, %21 : vector<16x128xf32>
    %23 = arith.negf %22 : vector<16x128xf32>
    %24 = math.exp %23 : vector<16x128xf32>
    %cst_20 = arith.constant 1.000000e+00 : f32
    %25 = vector.broadcast %cst_20 : f32 to vector<16x128xf32>
    %26 = arith.addf %25, %24 : vector<16x128xf32>
    %27 = arith.divf %25, %26 : vector<16x128xf32>
    %28 = vector.extract_strided_slice %17 {offsets = [0, 128], sizes = [16, 128], strides = [1, 1]} : vector<16x384xf32> to vector<16x128xf32>
    %29 = vector.extract_strided_slice %19 {offsets = [0, 128], sizes = [16, 128], strides = [1, 1]} : vector<16x384xf32> to vector<16x128xf32>
    %30 = arith.addf %28, %29 : vector<16x128xf32>
    %31 = arith.negf %30 : vector<16x128xf32>
    %32 = math.exp %31 : vector<16x128xf32>
    %cst_21 = arith.constant 1.000000e+00 : f32
    %33 = vector.broadcast %cst_21 : f32 to vector<16x128xf32>
    %34 = arith.addf %33, %32 : vector<16x128xf32>
    %35 = arith.divf %33, %34 : vector<16x128xf32>
    %36 = vector.extract_strided_slice %17 {offsets = [0, 256], sizes = [16, 128], strides = [1, 1]} : vector<16x384xf32> to vector<16x128xf32>
    %37 = vector.extract_strided_slice %19 {offsets = [0, 256], sizes = [16, 128], strides = [1, 1]} : vector<16x384xf32> to vector<16x128xf32>
    %38 = vector.broadcast %13 : vector<1x128xf32> to vector<16x128xf32>
    %39 = arith.addf %37, %38 : vector<16x128xf32>
    %40 = arith.mulf %27, %39 : vector<16x128xf32>
    %41 = arith.addf %36, %40 : vector<16x128xf32>
    %42 = math.tanh %41 : vector<16x128xf32>
    %cst_22 = arith.constant 1.000000e+00 : f32
    %43 = vector.broadcast %cst_22 : f32 to vector<16x128xf32>
    %44 = arith.subf %43, %35 : vector<16x128xf32>
    %45 = arith.mulf %44, %42 : vector<16x128xf32>
    %46 = arith.mulf %35, %14 : vector<16x128xf32>
    %47 = arith.addf %45, %46 : vector<16x128xf32>
    %c1_i32 = arith.constant 1 : i32
    %48 = arith.index_cast %c1_i32 : i32 to index
    %c0_23 = arith.constant 0 : index
    %c0_24 = arith.constant 0 : index
    %49 = vector.load %arg11[%48, %c0_23, %c0_24] : memref<4x16x384xf32, #tpu.memory_space<vmem>>, vector<1x16x384xf32>
    %50 = vector.shape_cast %49 : vector<1x16x384xf32> to vector<16x384xf32>
    %51 = arith.truncf %47 : vector<16x128xf32> to vector<16x128xbf16>
    %cst_25 = arith.constant dense<0.000000e+00> : vector<16x384xf32>
    %52 = tpu.matmul %51, %12, %cst_25 {dimension_numbers = #tpu.dot_dimension_numbers<[1], [0], [0], [1], [0, 0, 1, 1], [], []>} : vector<16x128xbf16>, vector<128x384xbf16>, vector<16x384xf32> -> vector<16x384xf32>
    %53 = vector.extract_strided_slice %50 {offsets = [0, 0], sizes = [16, 128], strides = [1, 1]} : vector<16x384xf32> to vector<16x128xf32>
    %54 = vector.extract_strided_slice %52 {offsets = [0, 0], sizes = [16, 128], strides = [1, 1]} : vector<16x384xf32> to vector<16x128xf32>
    %55 = arith.addf %53, %54 : vector<16x128xf32>
    %56 = arith.negf %55 : vector<16x128xf32>
    %57 = math.exp %56 : vector<16x128xf32>
    %cst_26 = arith.constant 1.000000e+00 : f32
    %58 = vector.broadcast %cst_26 : f32 to vector<16x128xf32>
    %59 = arith.addf %58, %57 : vector<16x128xf32>
    %60 = arith.divf %58, %59 : vector<16x128xf32>
    %61 = vector.extract_strided_slice %50 {offsets = [0, 128], sizes = [16, 128], strides = [1, 1]} : vector<16x384xf32> to vector<16x128xf32>
    %62 = vector.extract_strided_slice %52 {offsets = [0, 128], sizes = [16, 128], strides = [1, 1]} : vector<16x384xf32> to vector<16x128xf32>
    %63 = arith.addf %61, %62 : vector<16x128xf32>
    %64 = arith.negf %63 : vector<16x128xf32>
    %65 = math.exp %64 : vector<16x128xf32>
    %cst_27 = arith.constant 1.000000e+00 : f32
    %66 = vector.broadcast %cst_27 : f32 to vector<16x128xf32>
    %67 = arith.addf %66, %65 : vector<16x128xf32>
    %68 = arith.divf %66, %67 : vector<16x128xf32>
    %69 = vector.extract_strided_slice %50 {offsets = [0, 256], sizes = [16, 128], strides = [1, 1]} : vector<16x384xf32> to vector<16x128xf32>
    %70 = vector.extract_strided_slice %52 {offsets = [0, 256], sizes = [16, 128], strides = [1, 1]} : vector<16x384xf32> to vector<16x128xf32>
    %71 = vector.broadcast %13 : vector<1x128xf32> to vector<16x128xf32>
    %72 = arith.addf %70, %71 : vector<16x128xf32>
    %73 = arith.mulf %60, %72 : vector<16x128xf32>
    %74 = arith.addf %69, %73 : vector<16x128xf32>
    %75 = math.tanh %74 : vector<16x128xf32>
    %cst_28 = arith.constant 1.000000e+00 : f32
    %76 = vector.broadcast %cst_28 : f32 to vector<16x128xf32>
    %77 = arith.subf %76, %68 : vector<16x128xf32>
    %78 = arith.mulf %77, %75 : vector<16x128xf32>
    %79 = arith.mulf %68, %47 : vector<16x128xf32>
    %80 = arith.addf %78, %79 : vector<16x128xf32>
    %c2_i32 = arith.constant 2 : i32
    %81 = arith.index_cast %c2_i32 : i32 to index
    %c0_29 = arith.constant 0 : index
    %c0_30 = arith.constant 0 : index
    %82 = vector.load %arg11[%81, %c0_29, %c0_30] : memref<4x16x384xf32, #tpu.memory_space<vmem>>, vector<1x16x384xf32>
    %83 = vector.shape_cast %82 : vector<1x16x384xf32> to vector<16x384xf32>
    %84 = arith.truncf %80 : vector<16x128xf32> to vector<16x128xbf16>
    %cst_31 = arith.constant dense<0.000000e+00> : vector<16x384xf32>
    %85 = tpu.matmul %84, %12, %cst_31 {dimension_numbers = #tpu.dot_dimension_numbers<[1], [0], [0], [1], [0, 0, 1, 1], [], []>} : vector<16x128xbf16>, vector<128x384xbf16>, vector<16x384xf32> -> vector<16x384xf32>
    %86 = vector.extract_strided_slice %83 {offsets = [0, 0], sizes = [16, 128], strides = [1, 1]} : vector<16x384xf32> to vector<16x128xf32>
    %87 = vector.extract_strided_slice %85 {offsets = [0, 0], sizes = [16, 128], strides = [1, 1]} : vector<16x384xf32> to vector<16x128xf32>
    %88 = arith.addf %86, %87 : vector<16x128xf32>
    %89 = arith.negf %88 : vector<16x128xf32>
    %90 = math.exp %89 : vector<16x128xf32>
    %cst_32 = arith.constant 1.000000e+00 : f32
    %91 = vector.broadcast %cst_32 : f32 to vector<16x128xf32>
    %92 = arith.addf %91, %90 : vector<16x128xf32>
    %93 = arith.divf %91, %92 : vector<16x128xf32>
    %94 = vector.extract_strided_slice %83 {offsets = [0, 128], sizes = [16, 128], strides = [1, 1]} : vector<16x384xf32> to vector<16x128xf32>
    %95 = vector.extract_strided_slice %85 {offsets = [0, 128], sizes = [16, 128], strides = [1, 1]} : vector<16x384xf32> to vector<16x128xf32>
    %96 = arith.addf %94, %95 : vector<16x128xf32>
    %97 = arith.negf %96 : vector<16x128xf32>
    %98 = math.exp %97 : vector<16x128xf32>
    %cst_33 = arith.constant 1.000000e+00 : f32
    %99 = vector.broadcast %cst_33 : f32 to vector<16x128xf32>
    %100 = arith.addf %99, %98 : vector<16x128xf32>
    %101 = arith.divf %99, %100 : vector<16x128xf32>
    %102 = vector.extract_strided_slice %83 {offsets = [0, 256], sizes = [16, 128], strides = [1, 1]} : vector<16x384xf32> to vector<16x128xf32>
    %103 = vector.extract_strided_slice %85 {offsets = [0, 256], sizes = [16, 128], strides = [1, 1]} : vector<16x384xf32> to vector<16x128xf32>
    %104 = vector.broadcast %13 : vector<1x128xf32> to vector<16x128xf32>
    %105 = arith.addf %103, %104 : vector<16x128xf32>
    %106 = arith.mulf %93, %105 : vector<16x128xf32>
    %107 = arith.addf %102, %106 : vector<16x128xf32>
    %108 = math.tanh %107 : vector<16x128xf32>
    %cst_34 = arith.constant 1.000000e+00 : f32
    %109 = vector.broadcast %cst_34 : f32 to vector<16x128xf32>
    %110 = arith.subf %109, %101 : vector<16x128xf32>
    %111 = arith.mulf %110, %108 : vector<16x128xf32>
    %112 = arith.mulf %101, %80 : vector<16x128xf32>
    %113 = arith.addf %111, %112 : vector<16x128xf32>
    %c3_i32 = arith.constant 3 : i32
    %114 = arith.index_cast %c3_i32 : i32 to index
    %c0_35 = arith.constant 0 : index
    %c0_36 = arith.constant 0 : index
    %115 = vector.load %arg11[%114, %c0_35, %c0_36] : memref<4x16x384xf32, #tpu.memory_space<vmem>>, vector<1x16x384xf32>
    %116 = vector.shape_cast %115 : vector<1x16x384xf32> to vector<16x384xf32>
    %117 = arith.truncf %113 : vector<16x128xf32> to vector<16x128xbf16>
    %cst_37 = arith.constant dense<0.000000e+00> : vector<16x384xf32>
    %118 = tpu.matmul %117, %12, %cst_37 {dimension_numbers = #tpu.dot_dimension_numbers<[1], [0], [0], [1], [0, 0, 1, 1], [], []>} : vector<16x128xbf16>, vector<128x384xbf16>, vector<16x384xf32> -> vector<16x384xf32>
    %119 = vector.extract_strided_slice %116 {offsets = [0, 0], sizes = [16, 128], strides = [1, 1]} : vector<16x384xf32> to vector<16x128xf32>
    %120 = vector.extract_strided_slice %118 {offsets = [0, 0], sizes = [16, 128], strides = [1, 1]} : vector<16x384xf32> to vector<16x128xf32>
    %121 = arith.addf %119, %120 : vector<16x128xf32>
    %122 = arith.negf %121 : vector<16x128xf32>
    %123 = math.exp %122 : vector<16x128xf32>
    %cst_38 = arith.constant 1.000000e+00 : f32
    %124 = vector.broadcast %cst_38 : f32 to vector<16x128xf32>
    %125 = arith.addf %124, %123 : vector<16x128xf32>
    %126 = arith.divf %124, %125 : vector<16x128xf32>
    %127 = vector.extract_strided_slice %116 {offsets = [0, 128], sizes = [16, 128], strides = [1, 1]} : vector<16x384xf32> to vector<16x128xf32>
    %128 = vector.extract_strided_slice %118 {offsets = [0, 128], sizes = [16, 128], strides = [1, 1]} : vector<16x384xf32> to vector<16x128xf32>
    %129 = arith.addf %127, %128 : vector<16x128xf32>
    %130 = arith.negf %129 : vector<16x128xf32>
    %131 = math.exp %130 : vector<16x128xf32>
    %cst_39 = arith.constant 1.000000e+00 : f32
    %132 = vector.broadcast %cst_39 : f32 to vector<16x128xf32>
    %133 = arith.addf %132, %131 : vector<16x128xf32>
    %134 = arith.divf %132, %133 : vector<16x128xf32>
    %135 = vector.extract_strided_slice %116 {offsets = [0, 256], sizes = [16, 128], strides = [1, 1]} : vector<16x384xf32> to vector<16x128xf32>
    %136 = vector.extract_strided_slice %118 {offsets = [0, 256], sizes = [16, 128], strides = [1, 1]} : vector<16x384xf32> to vector<16x128xf32>
    %137 = vector.broadcast %13 : vector<1x128xf32> to vector<16x128xf32>
    %138 = arith.addf %136, %137 : vector<16x128xf32>
    %139 = arith.mulf %126, %138 : vector<16x128xf32>
    %140 = arith.addf %135, %139 : vector<16x128xf32>
    %141 = math.tanh %140 : vector<16x128xf32>
    %cst_40 = arith.constant 1.000000e+00 : f32
    %142 = vector.broadcast %cst_40 : f32 to vector<16x128xf32>
    %143 = arith.subf %142, %134 : vector<16x128xf32>
    %144 = arith.mulf %143, %141 : vector<16x128xf32>
    %145 = arith.mulf %134, %113 : vector<16x128xf32>
    %146 = arith.addf %144, %145 : vector<16x128xf32>
    %c4_i32 = arith.constant 4 : i32
    %c0_41 = arith.constant 0 : index
    %c0_42 = arith.constant 0 : index
    %147 = vector.load %arg12[%c0_41, %c0_42] : memref<16x128xf32, #tpu.memory_space<vmem>>, vector<16x128xf32>
    tpu.vector_store %arg12[%c0_41, %c0_42], %146 {strides = array<i32>} : memref<16x128xf32, #tpu.memory_space<vmem>>, vector<16x128xf32>,
    %c1_i32_43 = arith.constant 1 : i32
    %148 = arith.cmpi eq, %arg1, %c1_i32_43 : i32
    %149 = arith.extui %148 : i1 to i32
    %c0_i32_44 = arith.constant 0 : i32
    %150 = arith.cmpi ne, %149, %c0_i32_44 : i32
    scf.if %150 {
      %c0_45 = arith.constant 0 : index
      %c0_46 = arith.constant 0 : index
      %151 = vector.load %arg12[%c0_45, %c0_46] : memref<16x128xf32, #tpu.memory_space<vmem>>, vector<16x128xf32>
      %152 = arith.truncf %151 : vector<16x128xf32> to vector<16x128xbf16>
      %c0_47 = arith.constant 0 : index
      %c0_48 = arith.constant 0 : index
      %153 = vector.load %arg7[%c0_47, %c0_48] : memref<128x256xbf16, #tpu.memory_space<vmem>>, vector<128x256xbf16>
      %cst_49 = arith.constant dense<0.000000e+00> : vector<16x256xf32>
      %154 = tpu.matmul %152, %153, %cst_49 {dimension_numbers = #tpu.dot_dimension_numbers<[1], [0], [0], [1], [0, 0, 1, 1], [], []>} : vector<16x128xbf16>, vector<128x256xbf16>, vector<16x256xf32> -> vector<16x256xf32>
      %c0_50 = arith.constant 0 : index
      %c0_51 = arith.constant 0 : index
      %155 = vector.load %arg8[%c0_50, %c0_51] : memref<1x256xf32, #tpu.memory_space<vmem>>, vector<1x256xf32>
      %156 = vector.broadcast %155 : vector<1x256xf32> to vector<16x256xf32>
      %157 = arith.addf %154, %156 : vector<16x256xf32>
      %158 = vector.extract_strided_slice %157 {offsets = [0, 0], sizes = [16, 128], strides = [1, 1]} : vector<16x256xf32> to vector<16x128xf32>
      %159 = vector.extract_strided_slice %157 {offsets = [0, 128], sizes = [16, 128], strides = [1, 1]} : vector<16x256xf32> to vector<16x128xf32>
      %c0_52 = arith.constant 0 : index
      %c0_53 = arith.constant 0 : index
      %160 = vector.load %arg9[%c0_52, %c0_53] : memref<16x128xf32, #tpu.memory_space<vmem>>, vector<16x128xf32>
      %cst_54 = arith.constant 5.000000e-01 : f32
      %161 = vector.broadcast %cst_54 : f32 to vector<16x128xf32>
      %162 = arith.mulf %159, %161 : vector<16x128xf32>
      %163 = math.exp %162 : vector<16x128xf32>
      %164 = arith.mulf %160, %163 : vector<16x128xf32>
      %165 = arith.addf %158, %164 : vector<16x128xf32>
      %c0_55 = arith.constant 0 : index
      %c0_56 = arith.constant 0 : index
      %166 = vector.load %arg10[%c0_55, %c0_56] : memref<16x384xf32, #tpu.memory_space<vmem>>, vector<16x128xf32>
      tpu.vector_store %arg10[%c0_55, %c0_56], %165 {strides = array<i32>} : memref<16x384xf32, #tpu.memory_space<vmem>>, vector<16x128xf32>,
      %c0_57 = arith.constant 0 : index
      %c128 = arith.constant 128 : index
      %167 = vector.load %arg10[%c0_57, %c128] : memref<16x384xf32, #tpu.memory_space<vmem>>, vector<16x256xf32>
      tpu.vector_store %arg10[%c0_57, %c128], %157 {strides = array<i32>} : memref<16x384xf32, #tpu.memory_space<vmem>>, vector<16x256xf32>,
    } else {
    }
    return
  }
  func.func @transform_0(%arg0: i32, %arg1: i32) -> (i32, i32, i32) {
    %c0_i32 = arith.constant 0 : i32
    %c0_i32_0 = arith.constant 0 : i32
    return %arg1, %arg0, %c0_i32 : i32, i32, i32
  }
  func.func @transform_1(%arg0: i32, %arg1: i32) -> (i32, i32) {
    %c0_i32 = arith.constant 0 : i32
    %c0_i32_0 = arith.constant 0 : i32
    %c0_i32_1 = arith.constant 0 : i32
    return %c0_i32, %c0_i32_0 : i32, i32
  }
  func.func @transform_2(%arg0: i32, %arg1: i32) -> (i32, i32) {
    %c0_i32 = arith.constant 0 : i32
    %c0_i32_0 = arith.constant 0 : i32
    %c0_i32_1 = arith.constant 0 : i32
    return %c0_i32, %c0_i32_0 : i32, i32
  }
  func.func @transform_3(%arg0: i32, %arg1: i32) -> (i32, i32) {
    %c0_i32 = arith.constant 0 : i32
    %c0_i32_0 = arith.constant 0 : i32
    %c0_i32_1 = arith.constant 0 : i32
    return %c0_i32, %c0_i32_0 : i32, i32
  }
  func.func @transform_4(%arg0: i32, %arg1: i32) -> (i32, i32) {
    %c0_i32 = arith.constant 0 : i32
    %c0_i32_0 = arith.constant 0 : i32
    %c0_i32_1 = arith.constant 0 : i32
    return %c0_i32, %c0_i32_0 : i32, i32
  }
  func.func @transform_5(%arg0: i32, %arg1: i32) -> (i32, i32) {
    %c0_i32 = arith.constant 0 : i32
    %c0_i32_0 = arith.constant 0 : i32
    %c0_i32_1 = arith.constant 0 : i32
    return %c0_i32, %c0_i32_0 : i32, i32
  }
  func.func @transform_6(%arg0: i32, %arg1: i32) -> (i32, i32) {
    %c0_i32 = arith.constant 0 : i32
    %c0_i32_0 = arith.constant 0 : i32
    %c0_i32_1 = arith.constant 0 : i32
    return %c0_i32, %c0_i32_0 : i32, i32
  }
  func.func @transform_7(%arg0: i32, %arg1: i32) -> (i32, i32) {
    %c0_i32 = arith.constant 0 : i32
    %c0_i32_0 = arith.constant 0 : i32
    return %arg0, %c0_i32 : i32, i32
  }
  func.func @transform_8(%arg0: i32, %arg1: i32) -> (i32, i32) {
    %c0_i32 = arith.constant 0 : i32
    %c0_i32_0 = arith.constant 0 : i32
    return %arg0, %c0_i32 : i32, i32
  }
}

</mosaic_0001>

<bundles_post_ra>
// kernel: tpu_custom_call.1
= control target key start
LH: loop header
LB: loop body
LE: loop exit
PB: predicated region body
PF: predicated region fallthrough
CT: control target
= control target key end

     0   :  { %s3502_s0 = inlined_call_operand.hbm [shape: bf16[8,32,128], index: 0, kind: input, shape index: {}]   ;;  %s3503_s1 = inlined_call_operand.hbm [shape: bf16[128,384], index: 1, kind: input, shape index: {}]   ;;  %s3504_s2 = inlined_call_operand.hbm [shape: bf16[128,384], index: 2, kind: input, shape index: {}]   ;;  %s3505_s3 = inlined_call_operand.vmem [shape: f32[1,384], index: 3, kind: input, shape index: {}]   ;;  %s3506_s4 = inlined_call_operand.vmem [shape: f32[1,128], index: 4, kind: input, shape index: {}]   ;;  %s3507_s5 = inlined_call_operand.hbm [shape: bf16[128,256], index: 5, kind: input, shape index: {}]   ;;  %s3508_s6 = inlined_call_operand.vmem [shape: f32[1,256], index: 6, kind: input, shape index: {}]   ;;  %s3509_s7 = inlined_call_operand.hbm [shape: f32[32,128], index: 7, kind: input, shape index: {}]   ;;  %s3510_s8 = inlined_call_operand.hbm [shape: f32[32,384], index: 8, kind: output, shape index: {}]  }
   0x1   :  { %3530 = sst [smem:[#allocation34_spill]] %s3503_s1 }
   0x2   :  { %3531 = sst [smem:[#allocation35_spill]] %s3505_s3 }
   0x3   :  { %3532 = sst [smem:[#allocation36_spill]] %s3506_s4 }
   0x4   :  { %3533 = sst [smem:[#allocation37_spill]] %s3508_s6 }
   0x5   :  { %3534 = sst [smem:[#allocation38_spill]] %s3510_s8 }
   0x6   :  { %13 = vsyncpa [#allocation5], 0 }
   0x7   :  { %15 = vsyncpa [#allocation5 + $0x1], 0 }
   0x8   :  { %16 = vsyncpa [#allocation8], 0 }
   0x9   :  { %17 = vsyncpa [#allocation11], 0 }
   0xa   :  { %18 = vsyncpa [#allocation6], 0 }
   0xb   :  { %20 = vsyncpa [#allocation6 + $0x1], 0  ;;  %s2822_s27 = smov 0   ;;  %s2824_s28 = smov 0  }
   0xc   :  { %s2826_s29 = smov 0   ;;  %s2828_s30 = smov 0  }
   0xd   :  { %s2830_s9 = smov 0   ;;  %s2832_s10 = smov 0  }
   0xe   :  { %s2834_s11 = smov 0   ;;  %s2836_s12 = smov 0  }
   0xf   :  { %s2838_s13 = smov 0   ;;  %s2840_s14 = smov 0  }
  0x10   :  { %s2842_s15 = smov 0  }
  0x11 LB: > { %3535 = sst [smem:[#allocation22_spill]] %s2711_s27  ;;  %s2876_s16 = sadd.s32 4294967295, %s2751_s15   ;;  %s2751_s15 = sphi %s2842_s15, %s26_s15   ;;  %s2747_s14 = sphi %s2840_s14, %s3595_s14   ;;  %s2743_s13 = sphi %s2838_s13, %s3594_s13   ;;  %s2739_s12 = sphi %s2836_s12, %s3593_s12   ;;  %s2735_s11 = sphi %s2834_s11, %s3592_s11   ;;  %s2731_s10 = sphi %s2832_s10, %s3591_s10   ;;  %s2727_s9 = sphi %s2830_s9, %s3590_s9   ;;  %s2723_s30 = sphi %s2828_s30, %s3589_s30   ;;  %s2719_s29 = sphi %s2826_s29, %s3588_s29   ;;  %s2715_s28 = sphi %s2824_s28, %s3587_s28   ;;  %s2711_s27 = sphi %s2822_s27, %s3582_s27  }
  0x12   : > { %3536 = sst [smem:[#allocation23_spill]] %s2715_s28  ;;  %s1871_s17 = sadd.s32 4294967294, %s2751_s15  }
  0x13   : > { %3537 = sst [smem:[#allocation24_spill]] %s2735_s11  ;;  %s35_s18 = sadd.s32 1, %s2743_s13 }
  0x14   : > { %3538 = sst [smem:[#allocation25_spill]] %s2739_s12  ;;  %s38_s19 = sadd.s32 1, %s2747_s14 }
  0x15   : > { %p36_p0 = scmp.ge.s32.totalorder %s35_s18, 2  ;;  %s47_s20 = sadd.s32 1, %s2731_s10 }
  0x16   : > { %p54_p1 = scmp.ne.s32.totalorder %s2731_s10, %s2727_s9  ;;  %p55_p2 = scmp.eq.s32.totalorder %s2751_s15, 0 }
  0x17   : > { %s3597_s18 = smov (%p36_p0, %s35_s18), 0  ;;  %s3599_s19 = smov (!%p36_p0, %s38_s19), %s2747_s14 }
  0x18   : > { %3539 = sst [smem:[#allocation26_spill]] %s3597_s18  ;;  %s42_s21 = ssub.s32 %s2743_s13, %s3597_s18 }
  0x19   : > { %p2892_p3 = por %p55_p2, %p54_p1  ;;  %p40_p4 = scmp.ge.s32.totalorder %s3599_s19, 2 }
  0x1a   : > { %p60_p5 = scmp.ne.s32.totalorder %s2727_s9, %s2723_s30  ;;  %p3513_p6 = scmp.eq.s32.totalorder %s2876_s16, 0 }
  0x1b   : > { %s3540_s22 = scalar_select %p2892_p3, 1, 0 }
  0x1c   : > { %s199_s23 = sadd.s32 1, %s2719_s29  ;;  %s3601_s19 = smov (%p40_p4, %s3599_s19), 0 }
  0x1d   : > { %3541 = sst [smem:[#allocation27_spill]] %s3601_s19  ;;  %p2903_p7 = por %p3513_p6, %p60_p5 }
  0x1e   : > { %p206_p8 = scmp.ne.s32.totalorder %s2719_s29, %s2715_s28  ;;  %s43_s25 = ssub.s32 %s2747_s14, %s3601_s19 }
  0x1f   : > { %s3542_s24 = scalar_select %p2903_p7, 1, 0 }
  0x20   : > { %p212_p9 = scmp.ne.s32.totalorder %s2715_s28, %s2711_s27  ;;  %s44_s26 = sor.u32 %s43_s25, %s42_s21 }
  0x21   : > { %3543 = sst [smem:[#allocation28_spill]] %s3542_s24  ;;  %p197_p10 = scmp.eq.s32.totalorder %s43_s25, 0 }
  0x22   : > { %p45_p11 = scmp.eq.s32.totalorder %s44_s26, 0  ;;  %p2918_p12 = por %p206_p8, %p55_p2 }
  0x23   : > { %s2923_s18 = scalar_select %p197_p10, %s2719_s29, %s199_s23  }
  0x24   : > { %s3544_s30 = scalar_select %p2918_p12, 1, 0 }
  0x25   : > { %3545 = sst [smem:[#allocation29_spill]] %s2923_s18  ;;  %p2933_p13 = por %p212_p9, %p3513_p6 }
  0x26   : > { %s2926_s8 = scalar_select %p45_p11, %s2731_s10, %s47_s20  }
  0x27   : > { %s3547_s12 = scalar_select %p2933_p13, 1, 0 }
  0x28   : > { %3546 = sst [smem:[#allocation30_spill]] %s2926_s8  ;;  %p236_p0 = scmp.eq.s32.totalorder %s2876_s16, 3 }
  0x29   : > { %3548 = sst [smem:[#allocation31_spill]] %s3547_s12  ;;  %p242_p1 = scmp.eq.s32.totalorder %s1871_s17, 3 }
  0x2a   : > { %p1872_p4 = scmp.ge.s32.totalorder %s2751_s15, 1  ;;  %p2942_p5 = por %p236_p0, %p206_p8 }
  0x2b   : > { %p249_p2 = scmp.lt.s32.totalorder %s2751_s15, 5  ;;  %p2950_p10 = por %p242_p1, %p212_p9 }
  0x2c   : > { %s3549_s21 = scalar_select %p2942_p5, 1, 0 }
  0x2d   : > { %s3551_s23 = scalar_select %p2950_p10, 1, 0 }
  0x2e   : > { %3550 = sst [smem:[#allocation32_spill]] %s3549_s21  ;;  %p2954_p11 = pnand %p1872_p4, %p249_p2 }
  0x2f   : > { %3552 = sst [smem:[#allocation33_spill]] %s3551_s23  ;;  %s2753_s25 = smov [#allocation7]  }
  0x30   : > { %s3553_s20 = scalar_select %p2954_p11, 1, 0 }
  0x31   : > { %s261_s26 = sshll.u32 %s2753_s25, 4  ;;  %p2198_p6 = pneg %p2954_p11  ;;  %s2960_s26 = int_to_ptr.vmem [resolvable:$true] %s261_s26 }
  0x32   : > { %p3554_p8 = scmp.eq.s32.totalorder %s2876_s16, 0  ;;  %s2754_s19 = smov [#allocation9]  }
  0x33   : > { %s274_s8 = sshll.u32 %s2754_s19, 4  ;;  %s2755_s18 = smov [#allocation10]   ;;  %s2968_s8 = int_to_ptr.vmem [resolvable:$true] %s274_s8 }
  0x34   : > { %p2964_p0 = pnand %p2198_p6, %p3554_p8  ;;  %s2970_s23 = sshll.u32 %s2755_s18, 4  ;;  %s294_s23 = int_to_ptr.vmem [resolvable:$true] %s2970_s23 }
  0x35   : > { %s3556_s1 = sld [smem:[#allocation34_spill]] }
  0x36   : > { %p2980_p6 = pneg %p2964_p0 }
  0x3b   : > { %s2505_s25 = scalar_lea.hbm %s3556_s1, 3072 }
  0x3c   : > { %p2506_p9 = scmp.ne.s32.totalorder %s3556_s1, %s2505_s25  ;;  %p2512_p2 = scmp.lt.u32.totalorder %s2505_s25, %s3556_s1 }
  0x3e   : > { %p2508_p1 = pnand %p2980_p6, %p2506_p9 }
  0x40   : > { %p2509_p4 = pneg %p2508_p1 }
  0x42   : > { %p2514_p8 = pnand %p2512_p2, %p2509_p4 }
  0x44   : > { %2517 = shalt.err (!%p2514_p8)
}
  0x45   : > { %s2518_s4 = scalar_lea.vmem %s2960_s26, 3072  ;;  %p2526_p7 = scmp.lt.s32.totalorder %s2960_s26, %s2960_s26 }
  0x46   : > { %p2519_p10 = scmp.ne.s32.totalorder %s2960_s26, %s2518_s4  ;;  %p2527_p11 = scmp.lt.s32.totalorder %s2518_s4, %s2518_s4 }
  0x48   : > { %p2521_p5 = pnand %p2519_p10, %p2980_p6  ;;  %p2528_p9 = por %p2527_p11, %p2526_p7 }
  0x4a   : > { %p2522_p13 = pneg %p2521_p5 }
  0x4c   : > { %p2529_p1 = pnand %p2528_p9, %p2522_p13 }
  0x4e   : > { %2532 = shalt.err (!%p2529_p1)
}
  0x4f   : > { %s2756_s6 = smov 192   ;;  %s2757_s27 = smov 12  }
  0x50   : > { %2201 = dma.hbm_to_vmem [thread:$0]  (!%p2964_p0), %s3556_s1, 3072, %s2960_s26, [#allocation8], %s2756_s6, %s2756_s6, %s2757_s27  }
  0x51   : > { %s2533_s11 = scalar_lea.hbm %s3504_s2, 3072 }
  0x52   : > { %p2534_p7 = scmp.ne.s32.totalorder %s3504_s2, %s2533_s11  ;;  %p2540_p10 = scmp.lt.u32.totalorder %s2533_s11, %s3504_s2 }
  0x54   : > { %p2536_p13 = pnand %p2534_p7, %p2980_p6 }
  0x56   : > { %p2537_p5 = pneg %p2536_p13 }
  0x58   : > { %p2542_p11 = pnand %p2540_p10, %p2537_p5 }
  0x5a   : > { %2545 = shalt.err (!%p2542_p11)
}
  0x5b   : > { %s2546_s26 = scalar_lea.vmem %s2968_s8, 3072  ;;  %p2554_p9 = scmp.lt.s32.totalorder %s2968_s8, %s2968_s8 }
  0x5c   : > { %p2547_p4 = scmp.ne.s32.totalorder %s2968_s8, %s2546_s26  ;;  %p2555_p1 = scmp.lt.s32.totalorder %s2546_s26, %s2546_s26 }
  0x5e   : > { %p2549_p2 = pnand %p2547_p4, %p2980_p6  ;;  %p2556_p7 = por %p2555_p1, %p2554_p9 }
  0x60   : > { %p2550_p8 = pneg %p2549_p2 }
  0x62   : > { %p2557_p13 = pnand %p2556_p7, %p2550_p8 }
  0x64   : > { %2560 = shalt.err (!%p2557_p13)
}
  0x65   : > { %2204 = dma.hbm_to_vmem [thread:$0]  (!%p2964_p0), %s3504_s2, 3072, %s2968_s8, [#allocation8], %s2756_s6, %s2756_s6, %s2757_s27  }
  0x66   : > { %s2561_s21 = scalar_lea.hbm %s3507_s5, 2048 }
  0x67   : > { %p2562_p5 = scmp.ne.s32.totalorder %s3507_s5, %s2561_s21  ;;  %p2568_p4 = scmp.lt.u32.totalorder %s2561_s21, %s3507_s5 }
  0x69   : > { %p2564_p10 = pnand %p2562_p5, %p2980_p6 }
  0x6b   : > { %p2565_p11 = pneg %p2564_p10 }
  0x6d   : > { %p2570_p2 = pnand %p2568_p4, %p2565_p11 }
  0x6f   : > { %2573 = shalt.err (!%p2570_p2)
}
  0x70   : > { %s2574_s26 = scalar_lea.vmem %s294_s23, 2048  ;;  %p2582_p7 = scmp.lt.s32.totalorder %s294_s23, %s294_s23 }
  0x71   : > { %p2575_p8 = scmp.ne.s32.totalorder %s294_s23, %s2574_s26  ;;  %p2583_p13 = scmp.lt.s32.totalorder %s2574_s26, %s2574_s26 }
  0x73   : > { %p2577_p9 = pnand %p2575_p8, %p2980_p6  ;;  %p2584_p12 = por %p2583_p13, %p2582_p7 }
  0x75   : > { %p2578_p1 = pneg %p2577_p9 }
  0x77   : > { %p2585_p3 = pnand %p2584_p12, %p2578_p1 }
  0x79   : > { %2588 = shalt.err (!%p2585_p3)
}
  0x7a   : > { %s2758_s8 = smov 128   ;;  %s2759_s6 = smov 8  }
  0x7b   : > { %2207 = dma.hbm_to_vmem [thread:$0]  (!%p2964_p0), %s3507_s5, 2048, %s294_s23, [#allocation11], %s2758_s8, %s2758_s8, %s2759_s6  }
  0x7c   : > { %p1876_p5 = scmp.ge.s32.totalorder %s2751_s15, 4 }
  0x7e   : > { %306 = sbr.rel (%p1876_p5) target bundleno = 175 (0xaf), region = 40 }
  0x85   : > { %s312_s3 = sand.u32 1, %s2731_s10   ;;  %s1879_s12 = sshll.u32 %s2747_s14, 1 }
  0x86   : > { %s1877_s11 = sshll.u32 %s312_s3, 5  ;;  %s1985_s17 = sshll.u32 %s2743_s13, 4 }
  0x87   : > { %s310_s24 = sand.u32 1, %s2751_s15   ;;  %s321_s21 = sadd.s32 %s1985_s17, %s1879_s12 }
  0x88   : > { %s314_s23 = scalar_lea.vmem [#allocation4], %s1877_s11  ;;  %s1881_s19 = sshll.u32 %s321_s21, 6 }
  0x89   : > { %s336_s25 = sshll.u32 %s314_s23, 4  ;;  %s2760_s18 = smov 256   ;;  %s337_s25 = int_to_ptr.vmem [resolvable:$true] %s336_s25 }
  0x8a   : > { %p3558_p3 = scmp.ne.s32.totalorder %s3540_s22, 0  ;;  %s2761_s8 = smov 128  }
  0x8b   : > { %s2762_s6 = smov 2   ;;  %s2763_s27 = smov 64  }
  0x8c   : > { %2180 = sst [smem:[#allocation15]] (%p3558_p3), %s2760_s18  ;;  %s2764_s28 = smov 4  }
  0x8d   : > { %s2179_s4 = scalar_select %p3558_p3, [#allocation0], [#allocation16] }
  0x8e   : > { %2181 = sst [smem:[#allocation15 + $0x1]] (%p3558_p3), %s2761_s8  ;;  %s323_s12 = scalar_lea.hbm %s3502_s0, %s1881_s19 }
  0x8f   : > { %s328_s26 = sld [smem:[%s2179_s4]]   ;;  %s3065_s23 = scalar_lea.sflag [#allocation5], %s310_s24 }
  0x90   : > { %2182 = sst [smem:[#allocation15 + $0x2]] (%p3558_p3), %s2762_s6  ;;  %s2765_s18 = smov [#allocation14]  }
  0x91   : > { %2183 = sst [smem:[#allocation15 + $0x3]] (%p3558_p3), %s2763_s27  ;;  %s361_s4 = sand.u32 1, %s2719_s29  }
  0x92   : > { %2184 = sst [smem:[#allocation15 + $0x4]] (%p3558_p3), %s2763_s27  ;;  %s1986_s8 = sshll.u32 %s2747_s14, 8 }
  0x93   : > { %2185 = sst [smem:[#allocation15 + $0x5]] (%p3558_p3), %s2764_s28  ;;  %s1884_s6 = sshll.u32 %s361_s4, 4 }
  0x94   : > { %s3075_s1 = scalar_lea.hbm %s3509_s7, %s1986_s8  ;;  %s363_s24 = scalar_lea.vmem [#allocation12], %s1884_s6 }
  0x95   : > { %s1882_s17 = sshll.u32 %s328_s26, 26  ;;  %s370_s19 = sshll.u32 %s363_s24, 4  ;;  %s3077_s19 = int_to_ptr.vmem [resolvable:$true] %s370_s19 }
  0x96   : > { %s1883_s21 = sadd.s32 134217728, %s1882_s17  ;;  %s2589_s22 = scalar_lea.hbm %s3075_s1, 256 }
  0x97   : > { %2186 = dma.general (%p3558_p3), %s323_s12, 512, %s337_s25, %s3065_s23, %s2765_s18, [#allocation15], %s1883_s21, 0  }
  0x98   : > { %p2590_p12 = scmp.ne.s32.totalorder %s3075_s1, %s2589_s22  ;;  %p3559_p0 = scmp.ne.s32.totalorder %s3544_s30, 0 }
  0x99   : > { %s2593_s3 = scalar_lea.hbm %s3509_s7, 512  ;;  %p2594_p11 = scmp.lt.u32.totalorder %s3075_s1, %s3509_s7 }
  0x9a   : > { %p2591_p6 = pnand %p2590_p12, %p3559_p0  ;;  %p2595_p4 = scmp.lt.u32.totalorder %s2593_s3, %s2589_s22 }
  0x9b   : > { %p2597_p8 = scmp.lt.u32.totalorder %s2589_s22, %s3075_s1 }
  0x9c   : > { %p2592_p10 = pneg %p2591_p6  ;;  %p2596_p2 = por %p2595_p4, %p2594_p11 }
  0x9e   : > { %p2598_p9 = por %p2597_p8, %p2596_p2 }
  0xa0   : > { %p2599_p1 = pnand %p2598_p9, %p2592_p10 }
  0xa2   : > { %2602 = shalt.err (!%p2599_p1)
}
  0xa3   : > { %s2603_s17 = scalar_lea.vmem %s3077_s19, 256  ;;  %s2766_s21 = smov [#allocation12]  }
  0xa4   : > { %p2604_p7 = scmp.ne.s32.totalorder %s3077_s19, %s2603_s17  ;;  %s2607_s18 = sshll.u32 %s2766_s21, 4  ;;  %s2608_s18 = int_to_ptr.vmem [resolvable:$false] %s2607_s18 }
  0xa5   : > { %s2609_s4 = scalar_lea.vmem %s2608_s18, 512  ;;  %p2610_p3 = scmp.lt.s32.totalorder %s3077_s19, %s2608_s18 }
  0xa6   : > { %p2605_p13 = pnand %p2604_p7, %p3559_p0  ;;  %p2611_p12 = scmp.lt.s32.totalorder %s2609_s4, %s2603_s17 }
  0xa8   : > { %p2606_p5 = pneg %p2605_p13  ;;  %p2612_p6 = por %p2611_p12, %p2610_p3 }
  0xaa   : > { %p2613_p11 = pnand %p2612_p6, %p2606_p5 }
  0xac   : > { %2616 = shalt.err (!%p2613_p11)
}
  0xad   : > { %s2767_s8 = smov 128   ;;  %s2768_s6 = smov 8  }
  0xae   : > { %2187 = dma.hbm_to_vmem [thread:$0]  (%p3559_p0), %s3075_s1, 256, %s3077_s19, %s3065_s23, %s2767_s8, %s2767_s8, %s2768_s6  }
  0xaf PF: > { %p3560_p10 = scmp.ne.s32.totalorder %s3553_s20, 0 }
  0xb0   : > { %s3561_s27 = sld [smem:[#allocation28_spill]] (!%p3560_p10)  ;;  %s384_s28 = sand.u32 (!%p3560_p10), 1, %s2876_s16  }
  0xb1   : > { %382 = sbr.rel (%p3560_p10) target bundleno = 1611 (0x64b), region = 52  ;;  %s386_s24 = sand.u32 (!%p3560_p10), 1, %s2727_s9  }
  0xb2   : > { %s1888_s22 = sshll.u32 (!%p3560_p10), %s386_s24, 5  ;;  %s385_s25 = scalar_lea.sflag (!%p3560_p10), [#allocation5], %s384_s28 }
  0xb3   : > { %s3105_s26 = scalar_lea.vmem (!%p3560_p10), [#allocation4], %s1888_s22 }
  0xb6   : > { %p3562_p4 = scmp.ne.s32.totalorder (!%p3560_p10), %s3561_s27, 0 }
  0xb8   : > { %2690 = dma.done.wait (%p3562_p4), %s385_s25, 512  }
  0xb9   : > { %2692 = vsyncadd (%p3562_p4), %s385_s25, 4294966784  ;;  %p3563_p0 = scmp.eq.s32.totalorder %s2876_s16, 0 }
  0xbb   : > { %2694 = dma.done.wait (%p3563_p0), [#allocation8], 6144   ;;  %p3564_p2 = pmov %p3563_p0 }
  0xbc   : > { %p3565_p8 = pmov %p3563_p0 }
  0xbd   : > { %2696 = vsyncadd (%p3564_p2), [#allocation8], 4294961152 }
  0xbe   : > { %2698 = dma.done.wait (%p3565_p8), [#allocation11], 2048   ;;  %p3566_p9 = pmov %p3563_p0 }
  0xbf   : > { %s3567_s1 = sld [smem:[#allocation23_spill]]  ;;  %s3568_s30 = sld [smem:[#allocation31_spill]] }
  0xc0   : > { %2700 = vsyncadd (%p3566_p9), [#allocation11], 4294965248 }
  0xc5   : > { %s3120_s20 = sand.u32 1, %s3567_s1   ;;  %p3569_p1 = scmp.ne.s32.totalorder %s3568_s30, 0 }
  0xc6   : > { %s1892_s23 = sshll.u32 %s3120_s20, 4 }
  0xc7   : > { %s3123_s19 = scalar_lea.vmem [#allocation12], %s1892_s23 }
  0xc8   : > { %2702 = dma.done.wait (%p3569_p1), %s385_s25, 256  }
  0xc9   : > { %2704 = vsyncadd (%p3569_p1), %s385_s25, 4294967040  ;;  %s2171_s3 = smul.u32 48, %s3120_s20  ;;  %s3570_s12 = sld [smem:[#allocation24_spill]] }
  0xcb   : > { %s3130_s11 = scalar_lea.vmem [#allocation13], %s2171_s3 }
  0xcf   : > { %p1893_p7 = scmp.ne.s32.totalorder %s3570_s12, 0 }
  0xd0   : > { %v2769_v0 = vmov (!%p1893_p7), 0.0  }
  0xd1   : > { %455 = sbr.rel (%p1893_p7) target bundleno = 216 (0xd8), region = 76  ;;  %456 = vst [vmem:[#allocation3] sm:$0xff] (!%p1893_p7), %v2769_v0  ;;  %457 = vst [vmem:[#allocation3 + $0x8] sm:$0xff] (!%p1893_p7), %v2769_v0 }
  0xd8 PF: > { %v2329_v1 = vld [vmem:[#allocation7 + $0x4] ss:$12 sps:$4 sm:$0xff]   ;;  %v2331_v2 = vld [vmem:[#allocation7] ss:$12 sps:$4 sm:$0xff]   ;;  %v2770_v3 = vmov 0   ;;  %v2771_v35 = vmov 0.0   ;;  %v500_v58 = vlaneseq }
  0xd9   : > { %699 = vmatprep.mubr.bf16.mxu0 %v2770_v3  ;;  %667 = vmatprep.subr.bf16.mxu0 %v2329_v1  ;;  %v2332_v4 = vld [vmem:[#allocation7 + $0x1c] ss:$12 sps:$4 sm:$0xff]   ;;  %v2334_v5 = vld [vmem:[#allocation7 + $0x18] ss:$12 sps:$4 sm:$0xff]   ;;  %v2335_v6 = vld [vmem:[#allocation7 + $0x34] ss:$12 sps:$4 sm:$0xff]  }
  0xda   : > { %668 = vmatpush1.bf16.msra.mxu0 %v2331_v2  ;;  %v2337_v7 = vld [vmem:[#allocation7 + $0x30] ss:$12 sps:$4 sm:$0xff]   ;;  %v2338_v8 = vld [vmem:[#allocation7 + $0x4c] ss:$12 sps:$4 sm:$0xff]   ;;  %v2349_v9 = vld [vmem:[#allocation7 + $0x8] ss:$12 sps:$4 sm:$0xff]  }
  0xdb   : > { %669 = vmatprep.subr.bf16.mxu0 %v2332_v4  ;;  %v2340_v10 = vld [vmem:[#allocation7 + $0x48] ss:$12 sps:$4 sm:$0xff]   ;;  %2035 = vmatprep.subr.bf16.mxu1 %v2349_v9  ;;  %v2341_v11 = vld [vmem:[#allocation7 + $0x64] ss:$12 sps:$4 sm:$0xff]   ;;  %v2353_v12 = vld [vmem:[#allocation7 + $0x20] ss:$12 sps:$4 sm:$0xff]  }
  0xdc   : > { %2036 = vmatpush3.bf16.msra.mxu1 %v2349_v9  ;;  %v2355_v13 = vld [vmem:[%s3105_s26] sm:$0xff]   ;;  %v2344_v16 = vld [vmem:[#allocation7 + $0x7c] ss:$12 sps:$4 sm:$0xff]   ;;  %v2351_v22 = vld [vmem:[#allocation7 + $0xac] ss:$12 sps:$4 sm:$0xff]   ;;  %vm2772_vm0 = vmmov 0  }
  0xdd   : > { %2037 = vmatprep.subr.bf16.mxu1 %v2353_v12  ;;  %v2356_v14 = vld [vmem:[#allocation7 + $0x38] ss:$12 sps:$4 sm:$0xff]   ;;  %v2343_v15 = vld [vmem:[#allocation7 + $0x60] ss:$12 sps:$4 sm:$0xff]   ;;  %2051 = vmatprep.mubr.bf16.mxu1 %v2355_v13  ;;  %v2360_v17 = vld [vmem:[#allocation7 + $0x50] ss:$12 sps:$4 sm:$0xff]  }
  0xde   : > { %670 = vmatpush1.bf16.msra.mxu0 %v2334_v5  ;;  %v2346_v18 = vld [vmem:[#allocation7 + $0x78] ss:$12 sps:$4 sm:$0xff]   ;;  %v2347_v19 = vld [vmem:[#allocation7 + $0x94] ss:$12 sps:$4 sm:$0xff]   ;;  %v2350_v21 = vld [vmem:[#allocation7 + $0x90] ss:$12 sps:$4 sm:$0xff]  }
  0xdf   : > { %671 = vmatprep.subr.bf16.mxu0 %v2335_v6  ;;  %v2365_v20 = vld [vmem:[#allocation7 + $0x68] ss:$12 sps:$4 sm:$0xff]   ;;  %v2369_v23 = vld [vmem:[#allocation7 + $0x80] ss:$12 sps:$4 sm:$0xff]   ;;  %v3135_v25 = vld [vmem:[#allocation9 + $0x4] ss:$12 sps:$4 sm:$0xff]  }
  0xe0   : > { %2038 = vmatpush3.bf16.msra.mxu1 %v2353_v12  ;;  %v2354_v24 = vld [vmem:[#allocation7 + $0xa8] ss:$12 sps:$4 sm:$0xff]   ;;  %v2374_v26 = vld [vmem:[#allocation7 + $0x98] ss:$12 sps:$4 sm:$0xff]   ;;  %v3137_v27 = vld [vmem:[#allocation9] ss:$12 sps:$4 sm:$0xff]  }
  0xe1   : > { %2039 = vmatprep.subr.bf16.mxu1 %v2356_v14  ;;  %v3140_v28 = vld [vmem:[#allocation9 + $0x1c] ss:$12 sps:$4 sm:$0xff]   ;;  %v3143_v30 = vld [vmem:[#allocation9 + $0x18] ss:$12 sps:$4 sm:$0xff]   ;;  %v3147_v31 = vld [vmem:[#allocation9 + $0x34] ss:$12 sps:$4 sm:$0xff]  }
  0xe2   : > { %672 = vmatpush1.bf16.msra.mxu0 %v2337_v7  ;;  %v2378_v29 = vld [vmem:[#allocation7 + $0xb0] ss:$12 sps:$4 sm:$0xff]   ;;  %v2364_v32 = vld [vmem:[%s3105_s26 + $0x8] sm:$0xff]   ;;  %v3178_v43 = vld [vmem:[#allocation9 + $0x38] ss:$12 sps:$4 sm:$0xff]   ;;  %v3267_v59 = vshrl.u32 %v500_v58, 7 }
  0xe3   : > { %673 = vmatprep.subr.bf16.mxu0 %v2338_v8  ;;  %v3151_v33 = vld [vmem:[#allocation9 + $0x30] ss:$12 sps:$4 sm:$0xff]   ;;  %v3154_v34 = vld [vmem:[#allocation9 + $0x4c] ss:$12 sps:$4 sm:$0xff]   ;;  %v3157_v36 = vld [vmem:[#allocation9 + $0x8] ss:$12 sps:$4 sm:$0xff]  }
  0xe4   : > { %2040 = vmatpush3.bf16.msra.mxu1 %v2356_v14  ;;  %v3160_v37 = vld [vmem:[#allocation9 + $0x48] ss:$12 sps:$4 sm:$0xff]   ;;  %v3165_v39 = vld [vmem:[#allocation9 + $0x64] ss:$12 sps:$4 sm:$0xff]   ;;  %v3168_v40 = vld [vmem:[#allocation9 + $0x20] ss:$12 sps:$4 sm:$0xff]  }
  0xe5   : > { %2041 = vmatprep.subr.bf16.mxu1 %v2360_v17  ;;  %v2373_v38 = vld [vmem:[%s3105_s26 + $0x10] sm:$0xff]   ;;  %v3172_v41 = vld [vmem:[#allocation9 + $0x60] ss:$12 sps:$4 sm:$0xff]   ;;  %v3175_v42 = vld [vmem:[#allocation9 + $0x7c] ss:$12 sps:$4 sm:$0xff]   ;;  %v510_v60 = vsub.s32 2, %v3267_v59 }
  0xe6   : > { %674 = vmatpush1.bf16.msra.mxu0 %v2340_v10  ;;  %v2382_v44 = vld [vmem:[%s3105_s26 + $0x18] sm:$0xff]   ;;  %v3187_v46 = vld [vmem:[#allocation9 + $0x94] ss:$12 sps:$4 sm:$0xff]   ;;  %s3571_s21 = sld [smem:[#allocation35_spill]]  ;;  %v502_v14 = vsub.s32 0, %v3267_v59  ;;  %s3572_s8 = sld [smem:[#allocation36_spill]] }
  0xe7   : > { %675 = vmatprep.subr.bf16.mxu0 %v2341_v11  ;;  %v3183_v45 = vld [vmem:[#allocation9 + $0x78] ss:$12 sps:$4 sm:$0xff]   ;;  %v3190_v47 = vld [vmem:[#allocation9 + $0x50] ss:$12 sps:$4 sm:$0xff]   ;;  %v3202_v50 = vld [vmem:[#allocation9 + $0x68] ss:$12 sps:$4 sm:$0xff]  }
  0xe8   : > { %2042 = vmatpush3.bf16.msra.mxu1 %v2360_v17  ;;  %v3196_v48 = vld [vmem:[#allocation9 + $0x90] ss:$12 sps:$4 sm:$0xff]   ;;  %v3199_v49 = vld [vmem:[#allocation9 + $0xac] ss:$12 sps:$4 sm:$0xff]   ;;  %v3206_v51 = vld [vmem:[#allocation9 + $0xa8] ss:$12 sps:$4 sm:$0xff]  }
  0xe9   : > { %2043 = vmatprep.subr.bf16.mxu1 %v2365_v20  ;;  %v3209_v52 = vld [vmem:[#allocation3] sm:$0xff]  ;;  %v3211_v53 = vld [vmem:[#allocation3 + $0x8] sm:$0xff]  ;;  %v3215_v54 = vld [vmem:[#allocation9 + $0x80] ss:$12 sps:$4 sm:$0xff]   ;;  %s3573_s6 = sld [smem:[#allocation24_spill]] }
  0xea   : > { %676 = vmatpush1.bf16.msra.mxu0 %v2343_v15  ;;  %v870_v55 = vpack.c.bf16 %v3211_v53, %v3209_v52  ;;  %v3223_v56 = vld [vmem:[#allocation9 + $0x98] ss:$12 sps:$4 sm:$0xff]   ;;  %v3230_v57 = vld [vmem:[#allocation9 + $0xb0] ss:$12 sps:$4 sm:$0xff]   ;;  %v506_v15 = vsub.s32 1, %v3267_v59 }
  0xeb   : > { %677 = vmatprep.subr.bf16.mxu0 %v2344_v16 }
  0xec   : > { %2044 = vmatpush3.bf16.msra.mxu1 %v2365_v20  ;;  %v498_v61 = vld [vmem:[%s3571_s21] sm:$0x7] }
  0xed   : > { %2045 = vmatprep.subr.bf16.mxu1 %v2369_v23  ;;  %v511_v62 = vrot.slane %v498_v61, %v510_v60  ;;  %v3289_v16 = vrot.slane %v498_v61, %v502_v14 }
  0xee   : > { %678 = vmatpush1.bf16.msra.mxu0 %v2346_v18  ;;  %v3293_v18 = vrot.slane %v498_v61, %v506_v15 }
  0xef   : > { %679 = vmatprep.subr.bf16.mxu0 %v2347_v19  ;;  %p1963_p13 = scmp.ne.s32.totalorder %s3573_s6, 1 }
  0xf0   : > { %2046 = vmatpush3.bf16.msra.mxu1 %v2369_v23  ;;  %s3574_s24 = sld [smem:[#allocation37_spill]] (!%p1963_p13) }
  0xf1   : > { %2047 = vmatprep.subr.bf16.mxu1 %v2374_v26 }
  0xf2   : > { %680 = vmatpush1.bf16.msra.mxu0 %v2350_v21 }
  0xf3   : > { %681 = vmatprep.subr.bf16.mxu0 %v2351_v22 }
  0xf4   : > { %2048 = vmatpush3.bf16.msra.mxu1 %v2374_v26 }
  0xf5   : > { %2049 = vmatprep.subr.bf16.mxu1 %v2378_v29 }
  0xf6   : > { %682 = vmatpush1.bf16.msra.mxu0 %v2354_v24 }
  0xf7   : > { %999 = vmatprep.subr.bf16.mxu0 %v3135_v25 }
  0xf8   : > { %2050 = vmatpush3.bf16.msra.mxu1 %v2378_v29 }
  0xf9   : > { %700 = vmatmul.mubr.bf16.vlgmr.msra.gmra.mrb[0].mxu0 %v2355_v13  ;;  %2059 = vmatprep.subr.bf16.mxu1 %v2771_v35 }
  0xfa   : > { %1000 = vmatpush1.bf16.msra.mxu0 %v3137_v27  ;;  %709 = vmatprep.mubr.bf16.mxu0 %v2770_v3 }
  0xfb   : > { %1001 = vmatprep.subr.bf16.mxu0 %v3140_v28  ;;  %2052 = vmatmul.mubr.bf16.vlgmr.msra.gmra.mrb[0].mxu1 %v2364_v32 }
  0xfc   : > { %2060 = vmatpush3.bf16.msra.mxu1 %v3157_v36  ;;  %2055 = vmatprep.mubr.bf16.mxu1 %v2373_v38 }
  0xfd   : > { %2061 = vmatprep.subr.bf16.mxu1 %v2771_v35 }
  0xfe   : > { %1002 = vmatpush1.bf16.msra.mxu0 %v3143_v30 }
  0xff   : > { %1003 = vmatprep.subr.bf16.mxu0 %v3147_v31 }
 0x100   : > { %2062 = vmatpush3.bf16.msra.mxu1 %v3168_v40 }
 0x101   : > { %710 = vmatmul.mubr.bf16.gmra.mrb[4].mxu0 %v2364_v32  ;;  %2063 = vmatprep.subr.bf16.mxu1 %v2771_v35 }
 0x102   : > { %1004 = vmatpush1.bf16.msra.mxu0 %v3151_v33  ;;  %719 = vmatprep.mubr.bf16.mxu0 %v2770_v3 }
 0x103   : > { %1005 = vmatprep.subr.bf16.mxu0 %v3154_v34  ;;  %2056 = vmatmul.mubr.bf16.gmra.mrb[4].mxu1 %v2382_v44 }
 0x104   : > { %2064 = vmatpush3.bf16.msra.mxu1 %v3178_v43  ;;  %2075 = vmatprep.mubr.msk.bf16.mxu1 %vm2772_vm0, %v2771_v35 }
 0x105   : > { %2065 = vmatprep.subr.bf16.mxu1 %v2771_v35 }
 0x106   : > { %1006 = vmatpush1.bf16.msra.mxu0 %v3160_v37 }
 0x107   : > { %1007 = vmatprep.subr.bf16.mxu0 %v3165_v39 }
 0x108   : > { %2066 = vmatpush3.bf16.msra.mxu1 %v3190_v47 }
 0x109   : > { %720 = vmatmul.mubr.bf16.gmra.mrb[8].mxu0 %v2373_v38  ;;  %2067 = vmatprep.subr.bf16.mxu1 %v2771_v35 }
 0x10a   : > { %1008 = vmatpush1.bf16.msra.mxu0 %v3172_v41  ;;  %729 = vmatprep.mubr.bf16.mxu0 %v2770_v3 }
 0x10b   : > { %1009 = vmatprep.subr.bf16.mxu0 %v3175_v42 }
 0x10c   : > { %2068 = vmatpush3.bf16.msra.mxu1 %v3202_v50 }
 0x10d   : > { %2069 = vmatprep.subr.bf16.mxu1 %v2771_v35 }
 0x10e   : > { %1010 = vmatpush1.bf16.msra.mxu0 %v3183_v45 }
 0x10f   : > { %1011 = vmatprep.subr.bf16.mxu0 %v3187_v46 }
 0x110   : > { %2070 = vmatpush3.bf16.msra.mxu1 %v3215_v54 }
 0x111   : > { %730 = vmatmul.mubr.bf16.gmra.mrb[12].mxu0 %v2382_v44  ;;  %2071 = vmatprep.subr.bf16.mxu1 %v2771_v35 }
 0x112   : > { %1012 = vmatpush1.bf16.msra.mxu0 %v3196_v48  ;;  %1031 = vmatprep.mubr.bf16.mxu0 %v2770_v3 }
 0x113   : > { %1013 = vmatprep.subr.bf16.mxu0 %v3199_v49 }
 0x114   : > { %2072 = vmatpush3.bf16.msra.mxu1 %v3223_v56 }
 0x115   : > { %2073 = vmatprep.subr.bf16.mxu1 %v2771_v35 }
 0x116   : > { %1014 = vmatpush1.bf16.msra.mxu0 %v3206_v51 }
 0x117   : > { %1141 = vmatprep.subr.bf16.mxu0 %v3135_v25 }
 0x118   : > { %2074 = vmatpush3.bf16.msra.mxu1 %v3230_v57 }
 0x119   : > { %1032 = vmatmul.mubr.bf16.vlgmr.msra.gmra.mrb[0].mxu0 %v870_v55  ;;  %2079 = vmatprep.subr.bf16.mxu1 %v2771_v35 }
 0x11a   : > { %1142 = vmatpush1.bf16.msra.mxu0 %v3137_v27  ;;  %1173 = vmatprep.mubr.bf16.mxu0 %v2770_v3 }
 0x11b   : > { %1143 = vmatprep.subr.bf16.mxu0 %v3140_v28  ;;  %2076 = vmatmul.mubr.bf16.vlgmr.msra.gmra.mrb[8].mxu1 %v870_v55 }
 0x11c   : > { %2080 = vmatpush3.bf16.msra.mxu1 %v3157_v36  ;;  %2095 = vmatprep.mubr.msk.bf16.mxu1 %vm2772_vm0, %v2771_v35 }
 0x11d   : > { %2081 = vmatprep.subr.bf16.mxu1 %v2771_v35 }
 0x11e   : > { %1144 = vmatpush1.bf16.msra.mxu0 %v3143_v30 }
 0x11f   : > { %1145 = vmatprep.subr.bf16.mxu0 %v3147_v31 }
 0x120   : > { %2082 = vmatpush3.bf16.msra.mxu1 %v3168_v40 }
 0x121   : > { %2083 = vmatprep.subr.bf16.mxu1 %v2771_v35 }
 0x122   : > { %1146 = vmatpush1.bf16.msra.mxu0 %v3151_v33 }
 0x123   : > { %1147 = vmatprep.subr.bf16.mxu0 %v3154_v34 }
 0x124   : > { %2084 = vmatpush3.bf16.msra.mxu1 %v3178_v43 }
 0x125   : > { %2085 = vmatprep.subr.bf16.mxu1 %v2771_v35 }
 0x126   : > { %1148 = vmatpush1.bf16.msra.mxu0 %v3160_v37 }
 0x127   : > { %1149 = vmatprep.subr.bf16.mxu0 %v3165_v39 }
 0x128   : > { %2086 = vmatpush3.bf16.msra.mxu1 %v3190_v47 }
 0x129   : > { %2087 = vmatprep.subr.bf16.mxu1 %v2771_v35 }
 0x12a   : > { %1150 = vmatpush1.bf16.msra.mxu0 %v3172_v41 }
 0x12b   : > { %1151 = vmatprep.subr.bf16.mxu0 %v3175_v42 }
 0x12c   : > { %2088 = vmatpush3.bf16.msra.mxu1 %v3202_v50 }
 0x12d   : > { %2089 = vmatprep.subr.bf16.mxu1 %v2771_v35 }
 0x12e   : > { %1152 = vmatpush1.bf16.msra.mxu0 %v3183_v45 }
 0x12f   : > { %1153 = vmatprep.subr.bf16.mxu0 %v3187_v46 }
 0x130   : > { %2090 = vmatpush3.bf16.msra.mxu1 %v3215_v54 }
 0x131   : > { %2091 = vmatprep.subr.bf16.mxu1 %v2771_v35 }
 0x132   : > { %1154 = vmatpush1.bf16.msra.mxu0 %v3196_v48 }
 0x133   : > { %1155 = vmatprep.subr.bf16.mxu0 %v3199_v49 }
 0x134   : > { %2092 = vmatpush3.bf16.msra.mxu1 %v3223_v56 }
 0x135   : > { %2093 = vmatprep.subr.bf16.mxu1 %v2771_v35 }
 0x136   : > { %1156 = vmatpush1.bf16.msra.mxu0 %v3206_v51 }
 0x137   : > { %1277 = vmatprep.subr.bf16.mxu0 %v3135_v25 }
 0x138   : > { %2094 = vmatpush3.bf16.msra.mxu1 %v3230_v57 }
 0x139   : > { %2099 = vmatprep.subr.bf16.mxu1 %v2771_v35 }
 0x1ce   : > { %v2053_v63 = vpop.f32.mrb[0].mxu1 }
 0x1cf   : > { %v3273_v0 = vadd.f32 %v2053_v63, %v511_v62  ;;  %v774_v1 = vpop.f32.mrb[1].mxu1 }
 0x1d0   : > { %v2054_v2 = vpop.f32.mrb[2].mxu1 }
 0x1d1   : > { %v3275_v4 = vadd.f32 %v2054_v2, %v511_v62  ;;  %v777_v5 = vpop.f32.mrb[3].mxu1 }
 0x1d6   : > { %v2057_v6 = vpop.f32.mrb[4].mxu1 }
 0x1d7   : > { %v3277_v7 = vadd.f32 %v2057_v6, %v511_v62  ;;  %v790_v8 = vpop.f32.mrb[5].mxu1 }
 0x1d8   : > { %v3279_v9 = vadd.f32 %v790_v8, %v511_v62  ;;  %v2058_v10 = vpop.f32.mrb[6].mxu1 }
 0x1d9   : > { %v3281_v11 = vadd.f32 %v2058_v10, %v511_v62  ;;  %v793_v12 = vpop.f32.mrb[7].mxu1 }
 0x1da   : > { %v3283_v13 = vadd.f32 %v793_v12, %v511_v62  ;;  %v3302_v12 = vld [vmem:[%s3572_s8] ss:$0 sm:$0xff] }
 0x1ec   : > { %v1033_v17 = vpop.f32.mrb[0].mxu0 }
 0x1ed   : > { %v2139_v19 = vadd.f32 %v1033_v17, %v3289_v16  ;;  %v1035_v20 = vpop.f32.mrb[1].mxu0 }
 0x1ee   : > { %v1037_v21 = vpop.f32.mrb[2].mxu0  ;;  %v2140_v26 = vadd.f32 %v1035_v20, %v3293_v18  ;;  %v1076_v55 = vpop.f32.mrb[8].mxu1 }
 0x1ef   : > { %v1946_v22 = vmul.f32 -1.442695, %v2139_v19  ;;  %v2141_v23 = vadd.f32 %v1037_v21, %v3289_v16  ;;  %v1039_v24 = vpop.f32.mrb[3].mxu0  ;;  %v2077_v58 = vpop.f32.mrb[9].mxu1  ;;  %v1117_v20 = vadd.f32 %v3302_v12, %v1076_v55 }
 0x1f0   : > { %v2142_v32 = vadd.f32 %v1039_v24, %v3293_v18  ;;  %v1948_v38 = vmul.f32 -1.442695, %v2140_v26  ;;  %v1079_v60 = vpop.f32.mrb[10].mxu1 }
 0x1f1   : > { %2397 = vpow2.f32 %v1946_v22  ;;  %v1947_v29 = vmul.f32 -1.442695, %v2141_v23  ;;  %v2078_v61 = vpop.f32.mrb[11].mxu1  ;;  %v775_v23 = vadd.f32 %v774_v1, %v511_v62  ;;  %v1118_v26 = vadd.f32 %v3302_v12, %v1079_v60 }
 0x1f2   : > { %v1949_v44 = vmul.f32 -1.442695, %v2142_v32  ;;  %v778_v32 = vadd.f32 %v777_v5, %v511_v62 }
 0x1f3   : > { %2399 = vpow2.f32 %v1947_v29 }
 0x1f4   : > { %2401 = vpow2.f32 %v1948_v38 }
 0x1f5   : > { %2403 = vpow2.f32 %v1949_v44 }
 0x1fb   : > { %v2398_v63 = vpop.eup %2397 }
 0x1fc   : > { %v1091_v2 = vadd.f32 1.0, %v2398_v63 }
 0x1fd   : > { %v2400_v6 = vpop.eup %2399 }
 0x1fe   : > { %2405 = vrcp.f32 %v1091_v2  ;;  %v1092_v8 = vadd.f32 1.0, %v2400_v6  ;;  %v2402_v10 = vpop.eup %2401 }
 0x1ff   : > { %v2404_v17 = vpop.eup %2403  ;;  %v1105_v19 = vadd.f32 1.0, %v2402_v10 }
 0x200   : > { %2407 = vrcp.f32 %v1092_v8  ;;  %v1106_v21 = vadd.f32 1.0, %v2404_v17 }
 0x201   : > { %2409 = vrcp.f32 %v1105_v19 }
 0x202   : > { %2411 = vrcp.f32 %v1106_v21 }
 0x208   : > { %v2406_v22 = vpop.eup %2405 }
 0x209   : > { %v1119_v24 = vmul.f32 %v2406_v22, %v1117_v20 }
 0x20a   : > { %v2408_v29 = vpop.eup %2407 }
 0x20b   : > { %v1121_v38 = vadd.f32 %v1119_v24, %v775_v23  ;;  %v1120_v44 = vmul.f32 %v2408_v29, %v1118_v26  ;;  %v2410_v61 = vpop.eup %2409 }
 0x20c   : > { %v2412_v63 = vpop.eup %2411  ;;  %v1125_v2 = vsub.f32 1.0, %v2410_v61  ;;  %v1129_v1 = vmul.f32 %v2410_v61, %v3209_v52 }
 0x20d   : > { %2413 = vtanh.f32 %v1121_v38  ;;  %v1122_v58 = vadd.f32 %v1120_v44, %v778_v32  ;;  %v1126_v55 = vsub.f32 1.0, %v2412_v63  ;;  %v1130_v60 = vmul.f32 %v2412_v63, %v3211_v53 }
 0x20f   : > { %2415 = vtanh.f32 %v1122_v58 }
 0x217   : > { %v2414_v6 = vpop.eup %2413 }
 0x218   : > { %v1127_v8 = vmul.f32 %v2414_v6, %v1125_v2 }
 0x219   : > { %v2416_v10 = vpop.eup %2415 }
 0x21a   : > { %v1128_v17 = vmul.f32 %v2416_v10, %v1126_v55  ;;  %v3308_v19 = vadd.f32 %v1129_v1, %v1127_v8 }
 0x21c   : > { %v3310_v62 = vadd.f32 %v1130_v60, %v1128_v17 }
 0x21e   : > { %v1140_v5 = vpack.c.bf16 %v3310_v62, %v3308_v19 }
 0x220   : > { %1174 = vmatmul.mubr.bf16.vlgmr.msra.gmra.mrb[4].mxu0 %v1140_v5  ;;  %2096 = vmatmul.mubr.bf16.vlgmr.msra.gmra.mrb[12].mxu1 %v1140_v5 }
 0x221   : > { %1278 = vmatpush1.bf16.msra.mxu0 %v3137_v27  ;;  %2100 = vmatpush3.bf16.msra.mxu1 %v3157_v36 }
 0x222   : > { %1279 = vmatprep.subr.bf16.mxu0 %v3140_v28  ;;  %2101 = vmatprep.subr.bf16.mxu1 %v2771_v35 }
 0x223   : > { %1309 = vmatprep.mubr.bf16.mxu0 %v2770_v3  ;;  %2115 = vmatprep.mubr.msk.bf16.mxu1 %vm2772_vm0, %v2771_v35 }
 0x225   : > { %1280 = vmatpush1.bf16.msra.mxu0 %v3143_v30  ;;  %2102 = vmatpush3.bf16.msra.mxu1 %v3168_v40 }
 0x226   : > { %1281 = vmatprep.subr.bf16.mxu0 %v3147_v31  ;;  %2103 = vmatprep.subr.bf16.mxu1 %v2771_v35 }
 0x229   : > { %1282 = vmatpush1.bf16.msra.mxu0 %v3151_v33  ;;  %2104 = vmatpush3.bf16.msra.mxu1 %v3178_v43 }
 0x22a   : > { %1283 = vmatprep.subr.bf16.mxu0 %v3154_v34  ;;  %2105 = vmatprep.subr.bf16.mxu1 %v2771_v35 }
 0x22d   : > { %1284 = vmatpush1.bf16.msra.mxu0 %v3160_v37  ;;  %2106 = vmatpush3.bf16.msra.mxu1 %v3190_v47 }
 0x22e   : > { %1285 = vmatprep.subr.bf16.mxu0 %v3165_v39  ;;  %2107 = vmatprep.subr.bf16.mxu1 %v2771_v35 }
 0x231   : > { %1286 = vmatpush1.bf16.msra.mxu0 %v3172_v41  ;;  %2108 = vmatpush3.bf16.msra.mxu1 %v3202_v50 }
 0x232   : > { %1287 = vmatprep.subr.bf16.mxu0 %v3175_v42  ;;  %2109 = vmatprep.subr.bf16.mxu1 %v2771_v35 }
 0x235   : > { %1288 = vmatpush1.bf16.msra.mxu0 %v3183_v45  ;;  %2110 = vmatpush3.bf16.msra.mxu1 %v3215_v54 }
 0x236   : > { %1289 = vmatprep.subr.bf16.mxu0 %v3187_v46  ;;  %2111 = vmatprep.subr.bf16.mxu1 %v2771_v35 }
 0x239   : > { %1290 = vmatpush1.bf16.msra.mxu0 %v3196_v48  ;;  %2112 = vmatpush3.bf16.msra.mxu1 %v3223_v56 }
 0x23a   : > { %1291 = vmatprep.subr.bf16.mxu0 %v3199_v49  ;;  %2113 = vmatprep.subr.bf16.mxu1 %v2771_v35 }
 0x23d   : > { %1292 = vmatpush1.bf16.msra.mxu0 %v3206_v51  ;;  %2114 = vmatpush3.bf16.msra.mxu1 %v3230_v57 }
 0x23e   : > { %1413 = vmatprep.subr.bf16.mxu0 %v3135_v25  ;;  %2119 = vmatprep.subr.bf16.mxu1 %v2771_v35 }
 0x2f3   : > { %v1175_v52 = vpop.f32.mrb[4].mxu0  ;;  %v1218_v53 = vpop.f32.mrb[12].mxu1 }
 0x2f4   : > { %v2143_v20 = vadd.f32 %v1175_v52, %v3289_v16  ;;  %v1177_v21 = vpop.f32.mrb[5].mxu0  ;;  %v2097_v22 = vpop.f32.mrb[13].mxu1  ;;  %v1253_v60 = vadd.f32 %v3302_v12, %v1218_v53 }
 0x2f5   : > { %v1179_v23 = vpop.f32.mrb[6].mxu0  ;;  %v1221_v24 = vpop.f32.mrb[14].mxu1  ;;  %v2144_v44 = vadd.f32 %v1177_v21, %v3293_v18 }
 0x2f6   : > { %v1951_v26 = vmul.f32 -1.442695, %v2143_v20  ;;  %v2145_v29 = vadd.f32 %v1179_v23, %v3289_v16  ;;  %v1181_v32 = vpop.f32.mrb[7].mxu0  ;;  %v2098_v38 = vpop.f32.mrb[15].mxu1  ;;  %v1254_v21 = vadd.f32 %v3302_v12, %v1221_v24 }
 0x2f7   : > { %v2146_v25 = vadd.f32 %v1181_v32, %v3293_v18  ;;  %v1953_v61 = vmul.f32 -1.442695, %v2144_v44 }
 0x2f8   : > { %2417 = vpow2.f32 %v1951_v26  ;;  %v1952_v58 = vmul.f32 -1.442695, %v2145_v29 }
 0x2f9   : > { %v1954_v63 = vmul.f32 -1.442695, %v2146_v25 }
 0x2fa   : > { %2419 = vpow2.f32 %v1952_v58 }
 0x2fb   : > { %2421 = vpow2.f32 %v1953_v61 }
 0x2fc   : > { %2423 = vpow2.f32 %v1954_v63 }
 0x302   : > { %v2418_v2 = vpop.eup %2417 }
 0x303   : > { %v1233_v6 = vadd.f32 1.0, %v2418_v2 }
 0x304   : > { %v2420_v55 = vpop.eup %2419 }
 0x305   : > { %2425 = vrcp.f32 %v1233_v6  ;;  %v1234_v8 = vadd.f32 1.0, %v2420_v55  ;;  %v2422_v1 = vpop.eup %2421 }
 0x306   : > { %v2424_v10 = vpop.eup %2423  ;;  %v1247_v17 = vadd.f32 1.0, %v2422_v1 }
 0x307   : > { %2427 = vrcp.f32 %v1234_v8  ;;  %v1248_v5 = vadd.f32 1.0, %v2424_v10 }
 0x308   : > { %2429 = vrcp.f32 %v1247_v17 }
 0x309   : > { %2431 = vrcp.f32 %v1248_v5 }
 0x30f   : > { %v2426_v52 = vpop.eup %2425 }
 0x310   : > { %v1255_v20 = vmul.f32 %v2426_v52, %v1253_v60 }
 0x311   : > { %v2428_v22 = vpop.eup %2427 }
 0x312   : > { %v1257_v23 = vadd.f32 %v1255_v20, %v3273_v0  ;;  %v1256_v26 = vmul.f32 %v2428_v22, %v1254_v21  ;;  %v2430_v32 = vpop.eup %2429 }
 0x313   : > { %v2432_v38 = vpop.eup %2431  ;;  %v1261_v44 = vsub.f32 1.0, %v2430_v32  ;;  %v1265_v61 = vmul.f32 %v2430_v32, %v3308_v19 }
 0x314   : > { %2433 = vtanh.f32 %v1257_v23  ;;  %v1258_v29 = vadd.f32 %v1256_v26, %v3275_v4  ;;  %v1262_v53 = vsub.f32 1.0, %v2432_v38  ;;  %v1266_v24 = vmul.f32 %v2432_v38, %v3310_v62 }
 0x316   : > { %2435 = vtanh.f32 %v1258_v29 }
 0x31e   : > { %v2434_v58 = vpop.eup %2433 }
 0x31f   : > { %v1263_v25 = vmul.f32 %v2434_v58, %v1261_v44 }
 0x320   : > { %v2436_v63 = vpop.eup %2435 }
 0x321   : > { %v1264_v2 = vmul.f32 %v2436_v63, %v1262_v53  ;;  %v3359_v6 = vadd.f32 %v1265_v61, %v1263_v25 }
 0x323   : > { %v3361_v0 = vadd.f32 %v1266_v24, %v1264_v2 }
 0x325   : > { %v1276_v4 = vpack.c.bf16 %v3361_v0, %v3359_v6 }
 0x327   : > { %1310 = vmatmul.mubr.bf16.vlgmr.msra.gmra.mrb[8].mxu0 %v1276_v4  ;;  %2116 = vmatmul.mubr.bf16.vlgmr.msra.gmra.mrb[16].mxu1 %v1276_v4 }
 0x328   : > { %1414 = vmatpush1.bf16.msra.mxu0 %v3137_v27  ;;  %2120 = vmatpush3.bf16.msra.mxu1 %v3157_v36 }
 0x329   : > { %1415 = vmatprep.subr.bf16.mxu0 %v3140_v28  ;;  %2121 = vmatprep.subr.bf16.mxu1 %v2771_v35 }
 0x32a   : > { %1445 = vmatprep.mubr.bf16.mxu0 %v2770_v3  ;;  %2135 = vmatprep.mubr.msk.bf16.mxu1 %vm2772_vm0, %v2771_v35 }
 0x32c   : > { %1416 = vmatpush1.bf16.msra.mxu0 %v3143_v30  ;;  %2122 = vmatpush3.bf16.msra.mxu1 %v3168_v40 }
 0x32d   : > { %1417 = vmatprep.subr.bf16.mxu0 %v3147_v31  ;;  %2123 = vmatprep.subr.bf16.mxu1 %v2771_v35 }
 0x330   : > { %1418 = vmatpush1.bf16.msra.mxu0 %v3151_v33  ;;  %2124 = vmatpush3.bf16.msra.mxu1 %v3178_v43 }
 0x331   : > { %1419 = vmatprep.subr.bf16.mxu0 %v3154_v34  ;;  %2125 = vmatprep.subr.bf16.mxu1 %v2771_v35 }
 0x334   : > { %1420 = vmatpush1.bf16.msra.mxu0 %v3160_v37  ;;  %2126 = vmatpush3.bf16.msra.mxu1 %v3190_v47 }
 0x335   : > { %1421 = vmatprep.subr.bf16.mxu0 %v3165_v39  ;;  %2127 = vmatprep.subr.bf16.mxu1 %v2771_v35 }
 0x338   : > { %1422 = vmatpush1.bf16.msra.mxu0 %v3172_v41  ;;  %2128 = vmatpush3.bf16.msra.mxu1 %v3202_v50 }
 0x339   : > { %1423 = vmatprep.subr.bf16.mxu0 %v3175_v42  ;;  %2129 = vmatprep.subr.bf16.mxu1 %v2771_v35 }
 0x33c   : > { %1424 = vmatpush1.bf16.msra.mxu0 %v3183_v45  ;;  %2130 = vmatpush3.bf16.msra.mxu1 %v3215_v54 }
 0x33d   : > { %1425 = vmatprep.subr.bf16.mxu0 %v3187_v46  ;;  %2131 = vmatprep.subr.bf16.mxu1 %v2771_v35 }
 0x340   : > { %1426 = vmatpush1.bf16.msra.mxu0 %v3196_v48  ;;  %2132 = vmatpush3.bf16.msra.mxu1 %v3223_v56 }
 0x341   : > { %1427 = vmatprep.subr.bf16.mxu0 %v3199_v49  ;;  %2133 = vmatprep.subr.bf16.mxu1 %v2771_v35 }
 0x344   : > { %1428 = vmatpush1.bf16.msra.mxu0 %v3206_v51  ;;  %2134 = vmatpush3.bf16.msra.mxu1 %v3230_v57 }
 0x3fa   : > { %v1311_v3 = vpop.f32.mrb[8].mxu0  ;;  %v1354_v27 = vpop.f32.mrb[16].mxu1 }
 0x3fb   : > { %v2147_v28 = vadd.f32 %v1311_v3, %v3289_v16  ;;  %v1313_v30 = vpop.f32.mrb[9].mxu0  ;;  %v2117_v31 = vpop.f32.mrb[17].mxu1  ;;  %v1389_v56 = vadd.f32 %v3302_v12, %v1354_v27 }
 0x3fc   : > { %v1315_v33 = vpop.f32.mrb[10].mxu0  ;;  %v1357_v34 = vpop.f32.mrb[18].mxu1  ;;  %v2148_v41 = vadd.f32 %v1313_v30, %v3293_v18 }
 0x3fd   : > { %v1955_v36 = vmul.f32 -1.442695, %v2147_v28  ;;  %v2149_v37 = vadd.f32 %v1315_v33, %v3289_v16  ;;  %v1317_v39 = vpop.f32.mrb[11].mxu0  ;;  %v2118_v40 = vpop.f32.mrb[19].mxu1  ;;  %v1390_v55 = vadd.f32 %v3302_v12, %v1357_v34 }
 0x3fe   : > { %v2150_v42 = vadd.f32 %v1317_v39, %v3293_v18  ;;  %v1957_v43 = vmul.f32 -1.442695, %v2148_v41 }
 0x3ff   : > { %2437 = vpow2.f32 %v1955_v36  ;;  %v1956_v35 = vmul.f32 -1.442695, %v2149_v37 }
 0x400   : > { %v1958_v45 = vmul.f32 -1.442695, %v2150_v42 }
 0x401   : > { %2439 = vpow2.f32 %v1956_v35 }
 0x402   : > { %2441 = vpow2.f32 %v1957_v43 }
 0x403   : > { %2443 = vpow2.f32 %v1958_v45 }
 0x409   : > { %v2438_v46 = vpop.eup %2437 }
 0x40a   : > { %v1369_v47 = vadd.f32 1.0, %v2438_v46 }
 0x40b   : > { %v2440_v48 = vpop.eup %2439 }
 0x40c   : > { %2445 = vrcp.f32 %v1369_v47  ;;  %v1370_v49 = vadd.f32 1.0, %v2440_v48  ;;  %v2442_v50 = vpop.eup %2441 }
 0x40d   : > { %v2444_v51 = vpop.eup %2443  ;;  %v1383_v54 = vadd.f32 1.0, %v2442_v50 }
 0x40e   : > { %2447 = vrcp.f32 %v1370_v49  ;;  %v1384_v57 = vadd.f32 1.0, %v2444_v51 }
 0x40f   : > { %2449 = vrcp.f32 %v1383_v54 }
 0x410   : > { %2451 = vrcp.f32 %v1384_v57 }
 0x416   : > { %v2446_v19 = vpop.eup %2445 }
 0x417   : > { %v1391_v62 = vmul.f32 %v2446_v19, %v1389_v56 }
 0x418   : > { %v2448_v8 = vpop.eup %2447 }
 0x419   : > { %v1393_v1 = vadd.f32 %v1391_v62, %v3279_v9  ;;  %v1392_v10 = vmul.f32 %v2448_v8, %v1390_v55  ;;  %v2450_v60 = vpop.eup %2449 }
 0x41a   : > { %v2452_v5 = vpop.eup %2451  ;;  %v1397_v52 = vsub.f32 1.0, %v2450_v60  ;;  %v1401_v23 = vmul.f32 %v2450_v60, %v3359_v6  ;;  %v2482_v60 = vld [vmem:[#allocation10 + $0x10] ss:$8 sps:$4 sm:$0xff] (!%p1963_p13)  }
 0x41b   : > { %2453 = vtanh.f32 %v1393_v1  ;;  %v1394_v17 = vadd.f32 %v1392_v10, %v3283_v13  ;;  %v1398_v21 = vsub.f32 1.0, %v2452_v5  ;;  %v1402_v32 = vmul.f32 %v2452_v5, %v3361_v0  ;;  %v2483_v5 = vld [vmem:[#allocation10 + $0x24] ss:$8 sps:$4 sm:$0xff] (!%p1963_p13)  }
 0x41c   : > { %v2773_v10 = vmov (!%p1963_p13), 0  }
 0x41d   : > { %2455 = vtanh.f32 %v1394_v17  ;;  %v2480_v17 = vld [vmem:[#allocation10 + $0x14] ss:$8 sps:$4 sm:$0xff] (!%p1963_p13)  }
 0x425   : > { %v2454_v20 = vpop.eup %2453 }
 0x426   : > { %v1399_v22 = vmul.f32 %v2454_v20, %v1397_v52  ;;  %v2485_v52 = vld [vmem:[#allocation10 + $0x20] ss:$8 sps:$4 sm:$0xff] (!%p1963_p13)   ;;  %v2486_v20 = vld [vmem:[#allocation10 + $0x34] ss:$8 sps:$4 sm:$0xff] (!%p1963_p13)  }
 0x427   : > { %v2456_v26 = vpop.eup %2455 }
 0x428   : > { %v1400_v29 = vmul.f32 %v2456_v26, %v1398_v21  ;;  %v1403_v38 = vadd.f32 %v1401_v23, %v1399_v22  ;;  %v2488_v21 = vld [vmem:[#allocation10 + $0x30] ss:$8 sps:$4 sm:$0xff] (!%p1963_p13)   ;;  %v2489_v22 = vld [vmem:[#allocation10 + $0x44] ss:$8 sps:$4 sm:$0xff] (!%p1963_p13)   ;;  %v2491_v23 = vld [vmem:[#allocation10 + $0x40] ss:$8 sps:$4 sm:$0xff] (!%p1963_p13)  }
 0x429   : > { %v2492_v26 = vld [vmem:[#allocation10 + $0x54] ss:$8 sps:$4 sm:$0xff] (!%p1963_p13)  }
 0x42a   : > { %v1404_v9 = vadd.f32 %v1402_v32, %v1400_v29  ;;  %v2494_v29 = vld [vmem:[#allocation10 + $0x50] ss:$8 sps:$4 sm:$0xff] (!%p1963_p13)   ;;  %v2495_v32 = vld [vmem:[#allocation10 + $0x64] ss:$8 sps:$4 sm:$0xff] (!%p1963_p13)  }
 0x42c   : > { %v1412_v44 = vpack.c.bf16 %v1404_v9, %v1403_v38 }
 0x42e   : > { %1446 = vmatmul.mubr.bf16.vlgmr.msra.gmra.mrb[12].mxu0 %v1412_v44  ;;  %2136 = vmatmul.mubr.bf16.vlgmr.msra.gmra.mrb[20].mxu1 %v1412_v44  ;;  %v2500_v44 = vld [vmem:[#allocation10 + $0x70] ss:$8 sps:$4 sm:$0xff] (!%p1963_p13)  }
 0x42f   : > { %1690 = vmatprep.mubr.bf16.mxu0 (!%p1963_p13), %v2773_v10 }
 0x501   : > { %v1447_v58 = vpop.f32.mrb[12].mxu0  ;;  %v1490_v13 = vpop.f32.mrb[20].mxu1 }
 0x502   : > { %v2151_v53 = vadd.f32 %v1447_v58, %v3289_v16  ;;  %v1449_v25 = vpop.f32.mrb[13].mxu0  ;;  %v2137_v61 = vpop.f32.mrb[21].mxu1  ;;  %v1525_v41 = vadd.f32 %v3302_v12, %v1490_v13 }
 0x503   : > { %v1451_v63 = vpop.f32.mrb[14].mxu0  ;;  %v1493_v2 = vpop.f32.mrb[22].mxu1  ;;  %v2152_v0 = vadd.f32 %v1449_v25, %v3293_v18  ;;  %v1566_v25 = vld [vmem:[%s3574_s24] sm:$0x3] (!%p1963_p13) }
 0x504   : > { %v1959_v24 = vmul.f32 -1.442695, %v2151_v53  ;;  %v2153_v6 = vadd.f32 %v1451_v63, %v3289_v16  ;;  %v1453_v4 = vpop.f32.mrb[15].mxu0  ;;  %v2138_v3 = vpop.f32.mrb[23].mxu1  ;;  %v1571_v61 = vrot.slane (!%p1963_p13), %v1566_v25, %v502_v14  ;;  %v1575_v63 = vrot.slane (!%p1963_p13), %v1566_v25, %v506_v15 }
 0x505   : > { %v2154_v28 = vadd.f32 %v1453_v4, %v3293_v18  ;;  %v1961_v30 = vmul.f32 -1.442695, %v2152_v0  ;;  %v1526_v18 = vadd.f32 %v3302_v12, %v1493_v2 }
 0x506   : > { %2457 = vpow2.f32 %v1959_v24  ;;  %v1960_v27 = vmul.f32 -1.442695, %v2153_v6 }
 0x507   : > { %v1962_v31 = vmul.f32 -1.442695, %v2154_v28 }
 0x508   : > { %2459 = vpow2.f32 %v1960_v27 }
 0x509   : > { %2461 = vpow2.f32 %v1961_v30 }
 0x50a   : > { %2463 = vpow2.f32 %v1962_v31  ;;  %v1701_v31 = vld [vmem:[%s3123_s19] sm:$0xff] (!%p1963_p13) }
 0x510   : > { %v2458_v33 = vpop.eup %2457 }
 0x511   : > { %v1505_v34 = vadd.f32 1.0, %v2458_v33 }
 0x512   : > { %v2460_v36 = vpop.eup %2459 }
 0x513   : > { %2465 = vrcp.f32 %v1505_v34  ;;  %v1506_v37 = vadd.f32 1.0, %v2460_v36  ;;  %v2462_v16 = vpop.eup %2461  ;;  %v1702_v34 = vld [vmem:[%s3123_s19 + $0x8] sm:$0xff] (!%p1963_p13) }
 0x514   : > { %v2464_v39 = vpop.eup %2463  ;;  %v1519_v40 = vadd.f32 1.0, %v2462_v16 }
 0x515   : > { %2467 = vrcp.f32 %v1506_v37  ;;  %v1520_v35 = vadd.f32 1.0, %v2464_v39 }
 0x516   : > { %2469 = vrcp.f32 %v1519_v40 }
 0x517   : > { %2471 = vrcp.f32 %v1520_v35 }
 0x51d   : > { %v2466_v42 = vpop.eup %2465 }
 0x51e   : > { %v1527_v43 = vmul.f32 %v2466_v42, %v1525_v41 }
 0x51f   : > { %v2468_v45 = vpop.eup %2467 }
 0x520   : > { %v1529_v46 = vadd.f32 %v1527_v43, %v3277_v7  ;;  %v1528_v47 = vmul.f32 %v2468_v45, %v1526_v18  ;;  %v2470_v49 = vpop.eup %2469  ;;  %v2477_v7 = vld [vmem:[#allocation10 + $0x4] ss:$8 sps:$4 sm:$0xff] (!%p1963_p13)  }
 0x521   : > { %v2472_v50 = vpop.eup %2471  ;;  %v1533_v51 = vsub.f32 1.0, %v2470_v49  ;;  %v1537_v57 = vmul.f32 %v2470_v49, %v1403_v38  ;;  %1658 = vmatprep.subr.bf16.mxu0 (!%p1963_p13), %v2477_v7  ;;  %v2497_v38 = vld [vmem:[#allocation10 + $0x60] ss:$8 sps:$4 sm:$0xff] (!%p1963_p13)  }
 0x522   : > { %2473 = vtanh.f32 %v1529_v46  ;;  %v1530_v48 = vadd.f32 %v1528_v47, %v3281_v11  ;;  %v1534_v19 = vsub.f32 1.0, %v2472_v50  ;;  %v1538_v12 = vmul.f32 %v2472_v50, %v1404_v9  ;;  %v2479_v11 = vld [vmem:[#allocation10] ss:$8 sps:$4 sm:$0xff] (!%p1963_p13)   ;;  %v2498_v9 = vld [vmem:[#allocation10 + $0x74] ss:$8 sps:$4 sm:$0xff] (!%p1963_p13)  }
 0x523   : > { %1659 = vmatpush1.bf16.msra.mxu0 (!%p1963_p13), %v2479_v11 }
 0x524   : > { %2475 = vtanh.f32 %v1530_v48  ;;  %1660 = vmatprep.subr.bf16.mxu0 (!%p1963_p13), %v2480_v17 }
 0x527   : > { %1661 = vmatpush1.bf16.msra.mxu0 (!%p1963_p13), %v2482_v60 }
 0x528   : > { %1662 = vmatprep.subr.bf16.mxu0 (!%p1963_p13), %v2483_v5 }
 0x52b   : > { %1663 = vmatpush1.bf16.msra.mxu0 (!%p1963_p13), %v2485_v52 }
 0x52c   : > { %v2474_v54 = vpop.eup %2473  ;;  %1664 = vmatprep.subr.bf16.mxu0 (!%p1963_p13), %v2486_v20 }
 0x52d   : > { %v1535_v56 = vmul.f32 %v2474_v54, %v1533_v51  ;;  %1546 = sbr.rel (%p1963_p13) target bundleno = 1583 (0x62f), region = 80 }
 0x52e   : > { %v2476_v62 = vpop.eup %2475 }
 0x52f   : > { %v1539_v55 = vadd.f32 %v1537_v57, %v1535_v56  ;;  %v1536_v8 = vmul.f32 %v2476_v62, %v1534_v19  ;;  %1665 = vmatpush1.bf16.msra.mxu0 (!%p1963_p13), %v2488_v21 }
 0x530   : > { %1666 = vmatprep.subr.bf16.mxu0 (!%p1963_p13), %v2489_v22 }
 0x531   : > { %1541 = vst [vmem:[#allocation3] sm:$0xff] %v1539_v55  ;;  %v1540_v1 = vadd.f32 %v1538_v12, %v1536_v8 }
 0x533   : > { %1542 = vst [vmem:[#allocation3 + $0x8] sm:$0xff] %v1540_v1  ;;  %1667 = vmatpush1.bf16.msra.mxu0 (!%p1963_p13), %v2491_v23 }
 0x534   : > { %1668 = vmatprep.subr.bf16.mxu0 %v2492_v26 }
 0x537   : > { %1669 = vmatpush1.bf16.msra.mxu0 %v2494_v29 }
 0x538   : > { %1670 = vmatprep.subr.bf16.mxu0 %v2495_v32  ;;  %v1547_v58 = vld [vmem:[#allocation3] sm:$0xff] }
 0x53a   : > { %v1548_v13 = vld [vmem:[#allocation3 + $0x8] sm:$0xff] }
 0x53b   : > { %1671 = vmatpush1.bf16.msra.mxu0 %v2497_v38  ;;  %v1549_v53 = vpack.c.bf16 %v1548_v13, %v1547_v58 }
 0x53c   : > { %1672 = vmatprep.subr.bf16.mxu0 %v2498_v9 }
 0x53f   : > { %1673 = vmatpush1.bf16.msra.mxu0 %v2500_v44 }
 0x542   : > { %1691 = vmatmul.mubr.bf16.vlgmr.msra.gmra.mrb[0].mxu0 %v1549_v53 }
 0x615   : > { %v1692_v2 = vpop.f32.mrb[0].mxu0 }
 0x616   : > { %v1693_v24 = vadd.f32 %v1692_v2, %v1571_v61  ;;  %v1694_v6 = vpop.f32.mrb[1].mxu0 }
 0x617   : > { %v1695_v4 = vadd.f32 %v1694_v6, %v1575_v63  ;;  %v1696_v3 = vpop.f32.mrb[2].mxu0 }
 0x618   : > { %1715 = vst [vmem:[%s3130_s11 + $0x8] sm:$0xff] %v1693_v24  ;;  %v1697_v0 = vadd.f32 %v1696_v3, %v1571_v61  ;;  %v1698_v27 = vpop.f32.mrb[3].mxu0 }
 0x619   : > { %v1703_v28 = vmul.f32 0.5, %v1695_v4  ;;  %1716 = vst [vmem:[%s3130_s11 + $0x10] sm:$0xff] %v1695_v4  ;;  %v1699_v30 = vadd.f32 %v1698_v27, %v1575_v63 }
 0x61a   : > { %1717 = vst [vmem:[%s3130_s11 + $0x20] sm:$0xff] %v1697_v0 }
 0x61b   : > { %v1705_v14 = vmul.f32 1.442695, %v1703_v28  ;;  %v1704_v59 = vmul.f32 0.5, %v1699_v30  ;;  %1718 = vst [vmem:[%s3130_s11 + $0x28] sm:$0xff] %v1699_v30 }
 0x61d   : > { %2501 = vpow2.f32 %v1705_v14  ;;  %v1707_v15 = vmul.f32 1.442695, %v1704_v59 }
 0x61f   : > { %2503 = vpow2.f32 %v1707_v15 }
 0x627   : > { %v2502_v33 = vpop.eup %2501 }
 0x628   : > { %v1709_v36 = vmul.f32 %v2502_v33, %v1701_v31 }
 0x629   : > { %v2504_v37 = vpop.eup %2503 }
 0x62a   : > { %v1711_v16 = vadd.f32 %v1709_v36, %v1693_v24  ;;  %v1710_v39 = vmul.f32 %v2504_v37, %v1702_v34 }
 0x62c   : > { %1713 = vst [vmem:[%s3130_s11] sm:$0xff] %v1711_v16  ;;  %v1712_v40 = vadd.f32 %v1710_v39, %v1697_v0 }
 0x62e   : > { %1714 = vst [vmem:[%s3130_s11 + $0x18] sm:$0xff] %v1712_v40 }
 0x62f PF: > { %s3575_s22 = sld [smem:[#allocation25_spill]]  ;;  %s3576_s25 = sld [smem:[#allocation32_spill]] }
 0x630   : > { %s1734_s1 = sshll.u32 %s3130_s11, 4  ;;  %s3577_s3 = sld [smem:[#allocation38_spill]]  ;;  %s3439_s1 = int_to_ptr.vmem [resolvable:$true] %s1734_s1 }
 0x631   : > { %s1720_s19 = scalar_lea.sflag [#allocation6], %s3120_s20  ;;  %s2617_s16 = scalar_lea.vmem %s3439_s1, 768 }
 0x632   : > { %p2618_p5 = scmp.ne.s32.totalorder %s3439_s1, %s2617_s16  ;;  %s2774_s17 = smov [#allocation13]  }
 0x633   : > { %s2621_s21 = sshll.u32 %s2774_s17, 4  ;;  %s2622_s21 = int_to_ptr.vmem [resolvable:$false] %s2621_s21 }
 0x634   : > { %s2623_s11 = scalar_lea.vmem %s2622_s21, 1536  ;;  %p2624_p11 = scmp.lt.s32.totalorder %s3439_s1, %s2622_s21 }
 0x635   : > { %s2172_s26 = smul.u32 768, %s3575_s22  ;;  %p3578_p3 = scmp.ne.s32.totalorder %s3576_s25, 0 }
 0x636   : > { %p2625_p10 = scmp.lt.s32.totalorder %s2623_s11, %s2617_s16 }
 0x637   : > { %s3437_s12 = scalar_lea.hbm %s3577_s3, %s2172_s26  ;;  %p2619_p12 = pnand %p2618_p5, %p3578_p3 }
 0x638   : > { %p2626_p4 = por %p2625_p10, %p2624_p11 }
 0x639   : > { %p2620_p6 = pneg %p2619_p12 }
 0x63b   : > { %p2627_p0 = pnand %p2626_p4, %p2620_p6 }
 0x63d   : > { %2630 = shalt.err (!%p2627_p0)
}
 0x63e   : > { %s2631_s18 = scalar_lea.hbm %s3437_s12, 768  ;;  %s2635_s6 = scalar_lea.hbm %s3577_s3, 1536 }
 0x63f   : > { %p2632_p2 = scmp.ne.s32.totalorder %s3437_s12, %s2631_s18  ;;  %p2636_p1 = scmp.lt.u32.totalorder %s3437_s12, %s3577_s3 }
 0x640   : > { %p2637_p7 = scmp.lt.u32.totalorder %s2635_s6, %s2631_s18  ;;  %p2639_p5 = scmp.lt.u32.totalorder %s2631_s18, %s3437_s12 }
 0x641   : > { %p2633_p8 = pnand %p2632_p2, %p3578_p3 }
 0x642   : > { %p2638_p13 = por %p2637_p7, %p2636_p1 }
 0x643   : > { %p2634_p9 = pneg %p2633_p8 }
 0x644   : > { %p2640_p12 = por %p2639_p5, %p2638_p13 }
 0x646   : > { %p2641_p6 = pnand %p2640_p12, %p2634_p9 }
 0x648   : > { %2644 = shalt.err (!%p2641_p6)
}
 0x649   : > { %s2775_s24 = smov 384   ;;  %s2776_s22 = smov 24  }
 0x64a   : > { %2196 = dma.vmem_to_hbm [thread:$0]  (%p3578_p3), %s3439_s1, 768, %s3437_s12, %s1720_s19, %s2775_s24, %s2775_s24, %s2776_s22  }
 0x64b PF: > { %s3579_s26 = sld [smem:[#allocation22_spill]]  ;;  %s3580_s30 = sld [smem:[#allocation33_spill]] }
 0x64c   : > { %p2218_p11 = scmp.ge.s32.totalorder %s2751_s15, 2 }
 0x651   : > { %s1749_s23 = sand.u32 1, %s3579_s26   ;;  %p3581_p10 = scmp.ne.s32.totalorder %s3580_s30, 0 }
 0x652   : > { %s1750_s16 = scalar_lea.sflag [#allocation6], %s1749_s23 }
 0x653   : > { %p2209_p4 = pnand %p2218_p11, %p3581_p10 }
 0x655   : > { %2706 = dma.done.wait (!%p2209_p4), %s1750_s16, 768  }
 0x656   : > { %2708 = vsyncadd (!%p2209_p4), %s1750_s16, 4294966528  ;;  %s26_s15 = sadd.s32 1, %s2751_s15   ;;  %s3582_s27 = sld [smem:[#allocation23_spill]] }
 0x657   : > { %p23_p0 = scmp.ge.s32.totalorder %s26_s15, 6   ;;  %s3583_s17 = sld [smem:[#allocation29_spill]] }
 0x658   : > { %s3584_s20 = sld [smem:[#allocation30_spill]]  ;;  %s3585_s25 = sld [smem:[#allocation26_spill]] }
 0x659   : > { %s3586_s1 = sld [smem:[#allocation27_spill]]  ;;  %s3587_s28 = smov %s2719_s29 }
 0x65a   : > { %s3589_s30 = smov %s2727_s9  ;;  %s3590_s9 = smov %s2731_s10 }
 0x65b   : > { %s3592_s11 = smov %s2743_s13  ;;  %s3593_s12 = smov %s2747_s14 }
 0x65c   :  { %25 = sbr.rel (!%p23_p0) target bundleno = 17 (0x11), region = 136 }
 0x65d   : > { %s3588_s29 = smov %s3583_s17 }
 0x65e   : > { %s3591_s10 = smov %s3584_s20  ;;  %s3594_s13 = smov %s3585_s25 }
 0x65f   : > { %s3595_s14 = smov %s3586_s1 }
 0x663   :  { %1755 = vsyncpa [#allocation5], 1 }
 0x664   :  { %1757 = vsyncpa [#allocation5 + $0x1], 1 }
 0x665   :  { %1758 = vsyncpa [#allocation8], 1 }
 0x666   :  { %1759 = vsyncpa [#allocation11], 1 }
 0x667   :  { %1760 = vsyncpa [#allocation6], 1 }
 0x668   :  { %1762 = vsyncpa [#allocation6 + $0x1], 1 }

</bundles_post_ra>
